<compile_context>
chip_gen: v7x
topology: tpu7x:2x2x1
jax: 0.10.0
libtpu: 0.0.40
codegen_flags: <defaults>
</compile_context>

<pallas_src>
import functools

import jax
import jax.numpy as jnp
from jax.experimental import pallas as pl
from jax.experimental.pallas import tpu as pltpu

INPUT_DIM = 100 * 2          # 200
INT_DIM = 100
OUTPUT_DIMS = (1, 20, 20)
OUTPUT_DIM = 1 * 20 * 20     # 400
N_HIDDEN = 15                # 15 x (Linear -> BatchNorm1d -> Sigmoid)
EPS = 1e-5                   # nn.BatchNorm1d default eps

# Lane-padded (multiple-of-128) sizes used inside the kernel.
PAD_IN = 256                 # 200 -> 256
PAD_INT = 128                # 100 -> 128
PAD_OUT = 512                # 400 -> 512


def _use_bf16_epilogue():
    """bf16 VPU/EUP epilogue only on v6e/v7x-class chips; f32 elsewhere."""
    try:
        kind = jax.devices()[0].device_kind.lower()
    except Exception:
        return False
    return not any(g in kind for g in ("v2", "v3", "v4", "v5"))


_BF16_EPILOGUE = _use_bf16_epilogue()


def _sigmoid(x):
    # One EUP op (tanh) + one VPU FMA; dtype-preserving (weak-typed constants).
    return 0.5 * jnp.tanh(0.5 * x) + 0.5


def vgg_mlp_kernel(x_ref, w0_ref, wmid_ref, gamma_ref, beta_ref,
                   wout_ref, bout_ref, o_ref, xpad_ref, *, bf16_epilogue):
    """Whole VGG-MLP forward in one kernel (everything resident in VMEM).

    x_ref:     (B, 200)       bf16 (unpadded input, padded in-kernel)
    w0_ref:    (256, 128)     bf16 (zero-padded rows/cols)
    wmid_ref:  (14, 128, 128) bf16
    gamma_ref: (15, 128)      f32  (zero-padded cols)
    beta_ref:  (15, 128)      f32
    wout_ref:  (128, 512)     bf16
    bout_ref:  (1, 512)       f32
    o_ref:     (B, 400)       f32  (already lane-sliced to the logical width)
    xpad_ref:  (B, 256)       bf16 scratch (zero-padded copy of the input)
    """
    B = x_ref.shape[0]
    inv_b = 1.0 / B                      # static python float
    ep = jnp.bfloat16 if bf16_epilogue else jnp.float32

    def bn_sigmoid(h, gamma, beta):
        # Training-mode BatchNorm1d (batch statistics, biased variance).
        # Fused single reduce over [h | h*h]; stats / rsqrt stay in f32,
        # the per-element FMA + sigmoid run in the epilogue dtype.
        hh = jnp.concatenate([h, h * h], axis=-1)          # (B, 2*PAD_INT) f32
        s = jnp.sum(hh, axis=0, keepdims=True)             # one XLU pass
        s1 = s[:, :PAD_INT]
        s2 = s[:, PAD_INT:]
        mean = s1 * inv_b
        var = jnp.maximum(s2 * inv_b - mean * mean, 0.0)
        scale = gamma * jax.lax.rsqrt(var + EPS)
        shift = beta - mean * scale
        y = h.astype(ep) * scale.astype(ep) + shift.astype(ep)
        act = _sigmoid(y)
        # Next matmul operand must be bf16; free if the epilogue is bf16.
        return act if bf16_epilogue else act.astype(jnp.bfloat16)

    # In-kernel zero-pad of the input feature axis (200 -> 256).  Padded weight
    # rows are zero, so padded lanes contribute nothing to the first matmul.
    xpad_ref[...] = jnp.zeros_like(xpad_ref)
    xpad_ref[:, 0:INPUT_DIM] = x_ref[...]

    # Layer 0: Linear(200 -> 100, padded 256 -> 128) + BN + Sigmoid.
    # Hidden-layer biases are omitted: a bias added immediately before
    # training-mode BN is cancelled exactly by the mean subtraction.
    h = jnp.dot(xpad_ref[...], w0_ref[...], preferred_element_type=jnp.float32)
    h = bn_sigmoid(h, gamma_ref[0:1, :], beta_ref[0:1, :])

    # Layers 1..14: Linear(100 -> 100) + BN + Sigmoid (static unrolled loop).
    for i in range(1, N_HIDDEN):
        h = jnp.dot(h, wmid_ref[i - 1], preferred_element_type=jnp.float32)
        h = bn_sigmoid(h, gamma_ref[i:i + 1, :], beta_ref[i:i + 1, :])

    # Output layer: Linear(100 -> 400, padded 128 -> 512) + bias + Sigmoid,
    # in f32, lane-sliced to the logical 400 columns before the store.
    h = jnp.dot(h, wout_ref[...], preferred_element_type=jnp.float32)
    h = h + bout_ref[...]
    o_ref[...] = _sigmoid(h[:, :OUTPUT_DIM])


def init_params(key):
    """Deterministic synthetic parameter init.

    Logical shapes match the PyTorch module; storage is zero-padded to
    128-lane multiples (padded weight rows/cols MUST stay zero so padded
    activation lanes cannot propagate) and weights are stored as bf16.
    """
    ks = jax.random.split(key, 4)
    scale_in = 1.0 / jnp.sqrt(INPUT_DIM)
    scale_h = 1.0 / jnp.sqrt(INT_DIM)

    w0 = jax.random.uniform(ks[0], (INPUT_DIM, INT_DIM), jnp.float32,
                            -scale_in, scale_in)
    wmid = jax.random.uniform(ks[1], (N_HIDDEN - 1, INT_DIM, INT_DIM),
                              jnp.float32, -scale_h, scale_h)
    wout = jax.random.uniform(ks[2], (INT_DIM, OUTPUT_DIM), jnp.float32,
                              -scale_h, scale_h)
    bout = jax.random.uniform(ks[3], (1, OUTPUT_DIM), jnp.float32,
                              -scale_h, scale_h)
    gamma = jnp.ones((N_HIDDEN, INT_DIM), jnp.float32)    # BN weight init = 1
    beta = jnp.zeros((N_HIDDEN, INT_DIM), jnp.float32)    # BN bias init = 0

    return dict(
        w0=jnp.pad(w0, ((0, PAD_IN - INPUT_DIM),
                        (0, PAD_INT - INT_DIM))).astype(jnp.bfloat16),
        wmid=jnp.pad(wmid, ((0, 0),
                            (0, PAD_INT - INT_DIM),
                            (0, PAD_INT - INT_DIM))).astype(jnp.bfloat16),
        wout=jnp.pad(wout, ((0, PAD_INT - INT_DIM),
                            (0, PAD_OUT - OUTPUT_DIM))).astype(jnp.bfloat16),
        bout=jnp.pad(bout, ((0, 0), (0, PAD_OUT - OUTPUT_DIM))),
        gamma=jnp.pad(gamma, ((0, 0), (0, PAD_INT - INT_DIM))),
        beta=jnp.pad(beta, ((0, 0), (0, PAD_INT - INT_DIM))),
    )


@jax.jit
def vgg_forward(x, params):
    # x.view(-1, input_dim), cast to bf16 for the MXU; padding and the output
    # lane-slice are handled inside the kernel, so only the reshape remains.
    B = x.size // INPUT_DIM
    x2 = x.reshape(B, INPUT_DIM).astype(jnp.bfloat16)

    vmem = pl.BlockSpec(memory_space=pltpu.MemorySpace.VMEM)
    out = pl.pallas_call(
        functools.partial(vgg_mlp_kernel, bf16_epilogue=_BF16_EPILOGUE),
        out_shape=jax.ShapeDtypeStruct((B, OUTPUT_DIM), jnp.float32),
        in_specs=[vmem] * 7,
        out_specs=vmem,
        scratch_shapes=[pltpu.VMEM((B, PAD_IN), jnp.bfloat16)],
    )(x2, params['w0'], params['wmid'], params['gamma'], params['beta'],
      params['wout'], params['bout'])

    # x.view(-1, 1, 20, 20)
    return out.reshape(B, *OUTPUT_DIMS)


if __name__ == "__main__":
    key = jax.random.PRNGKey(0)
    k_x, k_p = jax.random.split(key)
    # Input with trailing dims flattening to input_dim=200: (8, 2, 10, 10)
    x = jax.random.normal(k_x, (8, 2, 10, 10), jnp.float32)
    params = init_params(k_p)

    y = vgg_forward(x, params)
    y = jax.block_until_ready(y)
    assert y.shape == (8, 1, 20, 20), y.shape
    print("KERNEL_OK")
</pallas_src>

<mosaic_0001>
module attributes {stable_mosaic.version = 11 : i64} {
  func.func @vgg_mlp_kernel(%arg0: memref<8x200xbf16, #tpu.memory_space<vmem>>, %arg1: memref<256x128xbf16, #tpu.memory_space<vmem>>, %arg2: memref<14x128x128xbf16, #tpu.memory_space<vmem>>, %arg3: memref<15x128xf32, #tpu.memory_space<vmem>>, %arg4: memref<15x128xf32, #tpu.memory_space<vmem>>, %arg5: memref<128x512xbf16, #tpu.memory_space<vmem>>, %arg6: memref<1x512xf32, #tpu.memory_space<vmem>>, %arg7: memref<8x400xf32, #tpu.memory_space<vmem>>, %arg8: memref<8x256xbf16, #tpu.memory_space<vmem>>) attributes {dimension_semantics = [], scalar_prefetch = 0 : i64, scratch_operands = 1 : i64, tpu.core_type = #tpu.core_type<tc>} {
    %cst = arith.constant 0.000000e+00 : bf16
    %0 = vector.broadcast %cst : bf16 to vector<8x256xbf16>
    %c0 = arith.constant 0 : index
    %c0_0 = arith.constant 0 : index
    %1 = vector.load %arg8[%c0, %c0_0] : memref<8x256xbf16, #tpu.memory_space<vmem>>, vector<8x256xbf16>
    tpu.vector_store %arg8[%c0, %c0_0], %0 {strides = array<i32>} : memref<8x256xbf16, #tpu.memory_space<vmem>>, vector<8x256xbf16>,
    %c0_1 = arith.constant 0 : index
    %c0_2 = arith.constant 0 : index
    %2 = vector.load %arg0[%c0_1, %c0_2] : memref<8x200xbf16, #tpu.memory_space<vmem>>, vector<8x200xbf16>
    %c0_3 = arith.constant 0 : index
    %c0_4 = arith.constant 0 : index
    %3 = vector.load %arg8[%c0_3, %c0_4] : memref<8x256xbf16, #tpu.memory_space<vmem>>, vector<8x200xbf16>
    tpu.vector_store %arg8[%c0_3, %c0_4], %2 {strides = array<i32>} : memref<8x256xbf16, #tpu.memory_space<vmem>>, vector<8x200xbf16>,
    %c0_5 = arith.constant 0 : index
    %c0_6 = arith.constant 0 : index
    %4 = vector.load %arg8[%c0_5, %c0_6] : memref<8x256xbf16, #tpu.memory_space<vmem>>, vector<8x256xbf16>
    %c0_7 = arith.constant 0 : index
    %c0_8 = arith.constant 0 : index
    %5 = vector.load %arg1[%c0_7, %c0_8] : memref<256x128xbf16, #tpu.memory_space<vmem>>, vector<256x128xbf16>
    %cst_9 = arith.constant dense<0.000000e+00> : vector<8x128xf32>
    %6 = tpu.matmul %4, %5, %cst_9 {dimension_numbers = #tpu.dot_dimension_numbers<[1], [0], [0], [1], [0, 0, 1, 1], [], []>} : vector<8x256xbf16>, vector<256x128xbf16>, vector<8x128xf32> -> vector<8x128xf32>
    %c0_10 = arith.constant 0 : index
    %c0_11 = arith.constant 0 : index
    %7 = vector.load %arg3[%c0_10, %c0_11] : memref<15x128xf32, #tpu.memory_space<vmem>>, vector<1x128xf32>
    %c0_12 = arith.constant 0 : index
    %c0_13 = arith.constant 0 : index
    %8 = vector.load %arg4[%c0_12, %c0_13] : memref<15x128xf32, #tpu.memory_space<vmem>>, vector<1x128xf32>
    %9 = arith.mulf %6, %6 : vector<8x128xf32>
    %10 = tpu.concatenate %6, %9 in 1 : vector<8x128xf32>, vector<8x128xf32> -> vector<8x256xf32>
    %cst_14 = arith.constant dense<0.000000e+00> : vector<256xf32>
    %11 = vector.multi_reduction <add>, %10, %cst_14 [0] : vector<8x256xf32> to vector<256xf32>
    %12 = vector.shape_cast %11 : vector<256xf32> to vector<1x256xf32>
    %13 = vector.extract_strided_slice %12 {offsets = [0, 0], sizes = [1, 128], strides = [1, 1]} : vector<1x256xf32> to vector<1x128xf32>
    %14 = vector.extract_strided_slice %12 {offsets = [0, 128], sizes = [1, 128], strides = [1, 1]} : vector<1x256xf32> to vector<1x128xf32>
    %cst_15 = arith.constant 1.250000e-01 : f32
    %15 = vector.broadcast %cst_15 : f32 to vector<1x128xf32>
    %16 = arith.mulf %13, %15 : vector<1x128xf32>
    %cst_16 = arith.constant 1.250000e-01 : f32
    %17 = vector.broadcast %cst_16 : f32 to vector<1x128xf32>
    %18 = arith.mulf %14, %17 : vector<1x128xf32>
    %19 = arith.mulf %16, %16 : vector<1x128xf32>
    %20 = arith.subf %18, %19 : vector<1x128xf32>
    %cst_17 = arith.constant 0.000000e+00 : f32
    %21 = vector.broadcast %cst_17 : f32 to vector<1x128xf32>
    %22 = arith.maximumf %20, %21 : vector<1x128xf32>
    %cst_18 = arith.constant 9.99999974E-6 : f32
    %23 = vector.broadcast %cst_18 : f32 to vector<1x128xf32>
    %24 = arith.addf %22, %23 : vector<1x128xf32>
    %25 = math.rsqrt %24 : vector<1x128xf32>
    %26 = arith.mulf %7, %25 : vector<1x128xf32>
    %27 = arith.mulf %16, %26 : vector<1x128xf32>
    %28 = arith.subf %8, %27 : vector<1x128xf32>
    %29 = arith.truncf %6 : vector<8x128xf32> to vector<8x128xbf16>
    %30 = arith.truncf %26 : vector<1x128xf32> to vector<1x128xbf16>
    %31 = vector.broadcast %30 : vector<1x128xbf16> to vector<8x128xbf16>
    %32 = arith.mulf %29, %31 : vector<8x128xbf16>
    %33 = arith.truncf %28 : vector<1x128xf32> to vector<1x128xbf16>
    %34 = vector.broadcast %33 : vector<1x128xbf16> to vector<8x128xbf16>
    %35 = arith.addf %32, %34 : vector<8x128xbf16>
    %cst_19 = arith.constant 5.000000e-01 : bf16
    %36 = vector.broadcast %cst_19 : bf16 to vector<8x128xbf16>
    %37 = arith.mulf %36, %35 : vector<8x128xbf16>
    %38 = math.tanh %37 : vector<8x128xbf16>
    %cst_20 = arith.constant 5.000000e-01 : bf16
    %39 = vector.broadcast %cst_20 : bf16 to vector<8x128xbf16>
    %40 = arith.mulf %39, %38 : vector<8x128xbf16>
    %cst_21 = arith.constant 5.000000e-01 : bf16
    %41 = vector.broadcast %cst_21 : bf16 to vector<8x128xbf16>
    %42 = arith.addf %40, %41 : vector<8x128xbf16>
    %c0_22 = arith.constant 0 : index
    %c0_23 = arith.constant 0 : index
    %c0_24 = arith.constant 0 : index
    %43 = vector.load %arg2[%c0_22, %c0_23, %c0_24] : memref<14x128x128xbf16, #tpu.memory_space<vmem>>, vector<1x128x128xbf16>
    %44 = vector.shape_cast %43 : vector<1x128x128xbf16> to vector<128x128xbf16>
    %cst_25 = arith.constant dense<0.000000e+00> : vector<8x128xf32>
    %45 = tpu.matmul %42, %44, %cst_25 {dimension_numbers = #tpu.dot_dimension_numbers<[1], [0], [0], [1], [0, 0, 1, 1], [], []>} : vector<8x128xbf16>, vector<128x128xbf16>, vector<8x128xf32> -> vector<8x128xf32>
    %c1 = arith.constant 1 : index
    %c0_26 = arith.constant 0 : index
    %46 = vector.load %arg3[%c1, %c0_26] : memref<15x128xf32, #tpu.memory_space<vmem>>, vector<1x128xf32>
    %c1_27 = arith.constant 1 : index
    %c0_28 = arith.constant 0 : index
    %47 = vector.load %arg4[%c1_27, %c0_28] : memref<15x128xf32, #tpu.memory_space<vmem>>, vector<1x128xf32>
    %48 = arith.mulf %45, %45 : vector<8x128xf32>
    %49 = tpu.concatenate %45, %48 in 1 : vector<8x128xf32>, vector<8x128xf32> -> vector<8x256xf32>
    %cst_29 = arith.constant dense<0.000000e+00> : vector<256xf32>
    %50 = vector.multi_reduction <add>, %49, %cst_29 [0] : vector<8x256xf32> to vector<256xf32>
    %51 = vector.shape_cast %50 : vector<256xf32> to vector<1x256xf32>
    %52 = vector.extract_strided_slice %51 {offsets = [0, 0], sizes = [1, 128], strides = [1, 1]} : vector<1x256xf32> to vector<1x128xf32>
    %53 = vector.extract_strided_slice %51 {offsets = [0, 128], sizes = [1, 128], strides = [1, 1]} : vector<1x256xf32> to vector<1x128xf32>
    %cst_30 = arith.constant 1.250000e-01 : f32
    %54 = vector.broadcast %cst_30 : f32 to vector<1x128xf32>
    %55 = arith.mulf %52, %54 : vector<1x128xf32>
    %cst_31 = arith.constant 1.250000e-01 : f32
    %56 = vector.broadcast %cst_31 : f32 to vector<1x128xf32>
    %57 = arith.mulf %53, %56 : vector<1x128xf32>
    %58 = arith.mulf %55, %55 : vector<1x128xf32>
    %59 = arith.subf %57, %58 : vector<1x128xf32>
    %cst_32 = arith.constant 0.000000e+00 : f32
    %60 = vector.broadcast %cst_32 : f32 to vector<1x128xf32>
    %61 = arith.maximumf %59, %60 : vector<1x128xf32>
    %cst_33 = arith.constant 9.99999974E-6 : f32
    %62 = vector.broadcast %cst_33 : f32 to vector<1x128xf32>
    %63 = arith.addf %61, %62 : vector<1x128xf32>
    %64 = math.rsqrt %63 : vector<1x128xf32>
    %65 = arith.mulf %46, %64 : vector<1x128xf32>
    %66 = arith.mulf %55, %65 : vector<1x128xf32>
    %67 = arith.subf %47, %66 : vector<1x128xf32>
    %68 = arith.truncf %45 : vector<8x128xf32> to vector<8x128xbf16>
    %69 = arith.truncf %65 : vector<1x128xf32> to vector<1x128xbf16>
    %70 = vector.broadcast %69 : vector<1x128xbf16> to vector<8x128xbf16>
    %71 = arith.mulf %68, %70 : vector<8x128xbf16>
    %72 = arith.truncf %67 : vector<1x128xf32> to vector<1x128xbf16>
    %73 = vector.broadcast %72 : vector<1x128xbf16> to vector<8x128xbf16>
    %74 = arith.addf %71, %73 : vector<8x128xbf16>
    %cst_34 = arith.constant 5.000000e-01 : bf16
    %75 = vector.broadcast %cst_34 : bf16 to vector<8x128xbf16>
    %76 = arith.mulf %75, %74 : vector<8x128xbf16>
    %77 = math.tanh %76 : vector<8x128xbf16>
    %cst_35 = arith.constant 5.000000e-01 : bf16
    %78 = vector.broadcast %cst_35 : bf16 to vector<8x128xbf16>
    %79 = arith.mulf %78, %77 : vector<8x128xbf16>
    %cst_36 = arith.constant 5.000000e-01 : bf16
    %80 = vector.broadcast %cst_36 : bf16 to vector<8x128xbf16>
    %81 = arith.addf %79, %80 : vector<8x128xbf16>
    %c1_37 = arith.constant 1 : index
    %c0_38 = arith.constant 0 : index
    %c0_39 = arith.constant 0 : index
    %82 = vector.load %arg2[%c1_37, %c0_38, %c0_39] : memref<14x128x128xbf16, #tpu.memory_space<vmem>>, vector<1x128x128xbf16>
    %83 = vector.shape_cast %82 : vector<1x128x128xbf16> to vector<128x128xbf16>
    %cst_40 = arith.constant dense<0.000000e+00> : vector<8x128xf32>
    %84 = tpu.matmul %81, %83, %cst_40 {dimension_numbers = #tpu.dot_dimension_numbers<[1], [0], [0], [1], [0, 0, 1, 1], [], []>} : vector<8x128xbf16>, vector<128x128xbf16>, vector<8x128xf32> -> vector<8x128xf32>
    %c2 = arith.constant 2 : index
    %c0_41 = arith.constant 0 : index
    %85 = vector.load %arg3[%c2, %c0_41] : memref<15x128xf32, #tpu.memory_space<vmem>>, vector<1x128xf32>
    %c2_42 = arith.constant 2 : index
    %c0_43 = arith.constant 0 : index
    %86 = vector.load %arg4[%c2_42, %c0_43] : memref<15x128xf32, #tpu.memory_space<vmem>>, vector<1x128xf32>
    %87 = arith.mulf %84, %84 : vector<8x128xf32>
    %88 = tpu.concatenate %84, %87 in 1 : vector<8x128xf32>, vector<8x128xf32> -> vector<8x256xf32>
    %cst_44 = arith.constant dense<0.000000e+00> : vector<256xf32>
    %89 = vector.multi_reduction <add>, %88, %cst_44 [0] : vector<8x256xf32> to vector<256xf32>
    %90 = vector.shape_cast %89 : vector<256xf32> to vector<1x256xf32>
    %91 = vector.extract_strided_slice %90 {offsets = [0, 0], sizes = [1, 128], strides = [1, 1]} : vector<1x256xf32> to vector<1x128xf32>
    %92 = vector.extract_strided_slice %90 {offsets = [0, 128], sizes = [1, 128], strides = [1, 1]} : vector<1x256xf32> to vector<1x128xf32>
    %cst_45 = arith.constant 1.250000e-01 : f32
    %93 = vector.broadcast %cst_45 : f32 to vector<1x128xf32>
    %94 = arith.mulf %91, %93 : vector<1x128xf32>
    %cst_46 = arith.constant 1.250000e-01 : f32
    %95 = vector.broadcast %cst_46 : f32 to vector<1x128xf32>
    %96 = arith.mulf %92, %95 : vector<1x128xf32>
    %97 = arith.mulf %94, %94 : vector<1x128xf32>
    %98 = arith.subf %96, %97 : vector<1x128xf32>
    %cst_47 = arith.constant 0.000000e+00 : f32
    %99 = vector.broadcast %cst_47 : f32 to vector<1x128xf32>
    %100 = arith.maximumf %98, %99 : vector<1x128xf32>
    %cst_48 = arith.constant 9.99999974E-6 : f32
    %101 = vector.broadcast %cst_48 : f32 to vector<1x128xf32>
    %102 = arith.addf %100, %101 : vector<1x128xf32>
    %103 = math.rsqrt %102 : vector<1x128xf32>
    %104 = arith.mulf %85, %103 : vector<1x128xf32>
    %105 = arith.mulf %94, %104 : vector<1x128xf32>
    %106 = arith.subf %86, %105 : vector<1x128xf32>
    %107 = arith.truncf %84 : vector<8x128xf32> to vector<8x128xbf16>
    %108 = arith.truncf %104 : vector<1x128xf32> to vector<1x128xbf16>
    %109 = vector.broadcast %108 : vector<1x128xbf16> to vector<8x128xbf16>
    %110 = arith.mulf %107, %109 : vector<8x128xbf16>
    %111 = arith.truncf %106 : vector<1x128xf32> to vector<1x128xbf16>
    %112 = vector.broadcast %111 : vector<1x128xbf16> to vector<8x128xbf16>
    %113 = arith.addf %110, %112 : vector<8x128xbf16>
    %cst_49 = arith.constant 5.000000e-01 : bf16
    %114 = vector.broadcast %cst_49 : bf16 to vector<8x128xbf16>
    %115 = arith.mulf %114, %113 : vector<8x128xbf16>
    %116 = math.tanh %115 : vector<8x128xbf16>
    %cst_50 = arith.constant 5.000000e-01 : bf16
    %117 = vector.broadcast %cst_50 : bf16 to vector<8x128xbf16>
    %118 = arith.mulf %117, %116 : vector<8x128xbf16>
    %cst_51 = arith.constant 5.000000e-01 : bf16
    %119 = vector.broadcast %cst_51 : bf16 to vector<8x128xbf16>
    %120 = arith.addf %118, %119 : vector<8x128xbf16>
    %c2_52 = arith.constant 2 : index
    %c0_53 = arith.constant 0 : index
    %c0_54 = arith.constant 0 : index
    %121 = vector.load %arg2[%c2_52, %c0_53, %c0_54] : memref<14x128x128xbf16, #tpu.memory_space<vmem>>, vector<1x128x128xbf16>
    %122 = vector.shape_cast %121 : vector<1x128x128xbf16> to vector<128x128xbf16>
    %cst_55 = arith.constant dense<0.000000e+00> : vector<8x128xf32>
    %123 = tpu.matmul %120, %122, %cst_55 {dimension_numbers = #tpu.dot_dimension_numbers<[1], [0], [0], [1], [0, 0, 1, 1], [], []>} : vector<8x128xbf16>, vector<128x128xbf16>, vector<8x128xf32> -> vector<8x128xf32>
    %c3 = arith.constant 3 : index
    %c0_56 = arith.constant 0 : index
    %124 = vector.load %arg3[%c3, %c0_56] : memref<15x128xf32, #tpu.memory_space<vmem>>, vector<1x128xf32>
    %c3_57 = arith.constant 3 : index
    %c0_58 = arith.constant 0 : index
    %125 = vector.load %arg4[%c3_57, %c0_58] : memref<15x128xf32, #tpu.memory_space<vmem>>, vector<1x128xf32>
    %126 = arith.mulf %123, %123 : vector<8x128xf32>
    %127 = tpu.concatenate %123, %126 in 1 : vector<8x128xf32>, vector<8x128xf32> -> vector<8x256xf32>
    %cst_59 = arith.constant dense<0.000000e+00> : vector<256xf32>
    %128 = vector.multi_reduction <add>, %127, %cst_59 [0] : vector<8x256xf32> to vector<256xf32>
    %129 = vector.shape_cast %128 : vector<256xf32> to vector<1x256xf32>
    %130 = vector.extract_strided_slice %129 {offsets = [0, 0], sizes = [1, 128], strides = [1, 1]} : vector<1x256xf32> to vector<1x128xf32>
    %131 = vector.extract_strided_slice %129 {offsets = [0, 128], sizes = [1, 128], strides = [1, 1]} : vector<1x256xf32> to vector<1x128xf32>
    %cst_60 = arith.constant 1.250000e-01 : f32
    %132 = vector.broadcast %cst_60 : f32 to vector<1x128xf32>
    %133 = arith.mulf %130, %132 : vector<1x128xf32>
    %cst_61 = arith.constant 1.250000e-01 : f32
    %134 = vector.broadcast %cst_61 : f32 to vector<1x128xf32>
    %135 = arith.mulf %131, %134 : vector<1x128xf32>
    %136 = arith.mulf %133, %133 : vector<1x128xf32>
    %137 = arith.subf %135, %136 : vector<1x128xf32>
    %cst_62 = arith.constant 0.000000e+00 : f32
    %138 = vector.broadcast %cst_62 : f32 to vector<1x128xf32>
    %139 = arith.maximumf %137, %138 : vector<1x128xf32>
    %cst_63 = arith.constant 9.99999974E-6 : f32
    %140 = vector.broadcast %cst_63 : f32 to vector<1x128xf32>
    %141 = arith.addf %139, %140 : vector<1x128xf32>
    %142 = math.rsqrt %141 : vector<1x128xf32>
    %143 = arith.mulf %124, %142 : vector<1x128xf32>
    %144 = arith.mulf %133, %143 : vector<1x128xf32>
    %145 = arith.subf %125, %144 : vector<1x128xf32>
    %146 = arith.truncf %123 : vector<8x128xf32> to vector<8x128xbf16>
    %147 = arith.truncf %143 : vector<1x128xf32> to vector<1x128xbf16>
    %148 = vector.broadcast %147 : vector<1x128xbf16> to vector<8x128xbf16>
    %149 = arith.mulf %146, %148 : vector<8x128xbf16>
    %150 = arith.truncf %145 : vector<1x128xf32> to vector<1x128xbf16>
    %151 = vector.broadcast %150 : vector<1x128xbf16> to vector<8x128xbf16>
    %152 = arith.addf %149, %151 : vector<8x128xbf16>
    %cst_64 = arith.constant 5.000000e-01 : bf16
    %153 = vector.broadcast %cst_64 : bf16 to vector<8x128xbf16>
    %154 = arith.mulf %153, %152 : vector<8x128xbf16>
    %155 = math.tanh %154 : vector<8x128xbf16>
    %cst_65 = arith.constant 5.000000e-01 : bf16
    %156 = vector.broadcast %cst_65 : bf16 to vector<8x128xbf16>
    %157 = arith.mulf %156, %155 : vector<8x128xbf16>
    %cst_66 = arith.constant 5.000000e-01 : bf16
    %158 = vector.broadcast %cst_66 : bf16 to vector<8x128xbf16>
    %159 = arith.addf %157, %158 : vector<8x128xbf16>
    %c3_67 = arith.constant 3 : index
    %c0_68 = arith.constant 0 : index
    %c0_69 = arith.constant 0 : index
    %160 = vector.load %arg2[%c3_67, %c0_68, %c0_69] : memref<14x128x128xbf16, #tpu.memory_space<vmem>>, vector<1x128x128xbf16>
    %161 = vector.shape_cast %160 : vector<1x128x128xbf16> to vector<128x128xbf16>
    %cst_70 = arith.constant dense<0.000000e+00> : vector<8x128xf32>
    %162 = tpu.matmul %159, %161, %cst_70 {dimension_numbers = #tpu.dot_dimension_numbers<[1], [0], [0], [1], [0, 0, 1, 1], [], []>} : vector<8x128xbf16>, vector<128x128xbf16>, vector<8x128xf32> -> vector<8x128xf32>
    %c4 = arith.constant 4 : index
    %c0_71 = arith.constant 0 : index
    %163 = vector.load %arg3[%c4, %c0_71] : memref<15x128xf32, #tpu.memory_space<vmem>>, vector<1x128xf32>
    %c4_72 = arith.constant 4 : index
    %c0_73 = arith.constant 0 : index
    %164 = vector.load %arg4[%c4_72, %c0_73] : memref<15x128xf32, #tpu.memory_space<vmem>>, vector<1x128xf32>
    %165 = arith.mulf %162, %162 : vector<8x128xf32>
    %166 = tpu.concatenate %162, %165 in 1 : vector<8x128xf32>, vector<8x128xf32> -> vector<8x256xf32>
    %cst_74 = arith.constant dense<0.000000e+00> : vector<256xf32>
    %167 = vector.multi_reduction <add>, %166, %cst_74 [0] : vector<8x256xf32> to vector<256xf32>
    %168 = vector.shape_cast %167 : vector<256xf32> to vector<1x256xf32>
    %169 = vector.extract_strided_slice %168 {offsets = [0, 0], sizes = [1, 128], strides = [1, 1]} : vector<1x256xf32> to vector<1x128xf32>
    %170 = vector.extract_strided_slice %168 {offsets = [0, 128], sizes = [1, 128], strides = [1, 1]} : vector<1x256xf32> to vector<1x128xf32>
    %cst_75 = arith.constant 1.250000e-01 : f32
    %171 = vector.broadcast %cst_75 : f32 to vector<1x128xf32>
    %172 = arith.mulf %169, %171 : vector<1x128xf32>
    %cst_76 = arith.constant 1.250000e-01 : f32
    %173 = vector.broadcast %cst_76 : f32 to vector<1x128xf32>
    %174 = arith.mulf %170, %173 : vector<1x128xf32>
    %175 = arith.mulf %172, %172 : vector<1x128xf32>
    %176 = arith.subf %174, %175 : vector<1x128xf32>
    %cst_77 = arith.constant 0.000000e+00 : f32
    %177 = vector.broadcast %cst_77 : f32 to vector<1x128xf32>
    %178 = arith.maximumf %176, %177 : vector<1x128xf32>
    %cst_78 = arith.constant 9.99999974E-6 : f32
    %179 = vector.broadcast %cst_78 : f32 to vector<1x128xf32>
    %180 = arith.addf %178, %179 : vector<1x128xf32>
    %181 = math.rsqrt %180 : vector<1x128xf32>
    %182 = arith.mulf %163, %181 : vector<1x128xf32>
    %183 = arith.mulf %172, %182 : vector<1x128xf32>
    %184 = arith.subf %164, %183 : vector<1x128xf32>
    %185 = arith.truncf %162 : vector<8x128xf32> to vector<8x128xbf16>
    %186 = arith.truncf %182 : vector<1x128xf32> to vector<1x128xbf16>
    %187 = vector.broadcast %186 : vector<1x128xbf16> to vector<8x128xbf16>
    %188 = arith.mulf %185, %187 : vector<8x128xbf16>
    %189 = arith.truncf %184 : vector<1x128xf32> to vector<1x128xbf16>
    %190 = vector.broadcast %189 : vector<1x128xbf16> to vector<8x128xbf16>
    %191 = arith.addf %188, %190 : vector<8x128xbf16>
    %cst_79 = arith.constant 5.000000e-01 : bf16
    %192 = vector.broadcast %cst_79 : bf16 to vector<8x128xbf16>
    %193 = arith.mulf %192, %191 : vector<8x128xbf16>
    %194 = math.tanh %193 : vector<8x128xbf16>
    %cst_80 = arith.constant 5.000000e-01 : bf16
    %195 = vector.broadcast %cst_80 : bf16 to vector<8x128xbf16>
    %196 = arith.mulf %195, %194 : vector<8x128xbf16>
    %cst_81 = arith.constant 5.000000e-01 : bf16
    %197 = vector.broadcast %cst_81 : bf16 to vector<8x128xbf16>
    %198 = arith.addf %196, %197 : vector<8x128xbf16>
    %c4_82 = arith.constant 4 : index
    %c0_83 = arith.constant 0 : index
    %c0_84 = arith.constant 0 : index
    %199 = vector.load %arg2[%c4_82, %c0_83, %c0_84] : memref<14x128x128xbf16, #tpu.memory_space<vmem>>, vector<1x128x128xbf16>
    %200 = vector.shape_cast %199 : vector<1x128x128xbf16> to vector<128x128xbf16>
    %cst_85 = arith.constant dense<0.000000e+00> : vector<8x128xf32>
    %201 = tpu.matmul %198, %200, %cst_85 {dimension_numbers = #tpu.dot_dimension_numbers<[1], [0], [0], [1], [0, 0, 1, 1], [], []>} : vector<8x128xbf16>, vector<128x128xbf16>, vector<8x128xf32> -> vector<8x128xf32>
    %c5 = arith.constant 5 : index
    %c0_86 = arith.constant 0 : index
    %202 = vector.load %arg3[%c5, %c0_86] : memref<15x128xf32, #tpu.memory_space<vmem>>, vector<1x128xf32>
    %c5_87 = arith.constant 5 : index
    %c0_88 = arith.constant 0 : index
    %203 = vector.load %arg4[%c5_87, %c0_88] : memref<15x128xf32, #tpu.memory_space<vmem>>, vector<1x128xf32>
    %204 = arith.mulf %201, %201 : vector<8x128xf32>
    %205 = tpu.concatenate %201, %204 in 1 : vector<8x128xf32>, vector<8x128xf32> -> vector<8x256xf32>
    %cst_89 = arith.constant dense<0.000000e+00> : vector<256xf32>
    %206 = vector.multi_reduction <add>, %205, %cst_89 [0] : vector<8x256xf32> to vector<256xf32>
    %207 = vector.shape_cast %206 : vector<256xf32> to vector<1x256xf32>
    %208 = vector.extract_strided_slice %207 {offsets = [0, 0], sizes = [1, 128], strides = [1, 1]} : vector<1x256xf32> to vector<1x128xf32>
    %209 = vector.extract_strided_slice %207 {offsets = [0, 128], sizes = [1, 128], strides = [1, 1]} : vector<1x256xf32> to vector<1x128xf32>
    %cst_90 = arith.constant 1.250000e-01 : f32
    %210 = vector.broadcast %cst_90 : f32 to vector<1x128xf32>
    %211 = arith.mulf %208, %210 : vector<1x128xf32>
    %cst_91 = arith.constant 1.250000e-01 : f32
    %212 = vector.broadcast %cst_91 : f32 to vector<1x128xf32>
    %213 = arith.mulf %209, %212 : vector<1x128xf32>
    %214 = arith.mulf %211, %211 : vector<1x128xf32>
    %215 = arith.subf %213, %214 : vector<1x128xf32>
    %cst_92 = arith.constant 0.000000e+00 : f32
    %216 = vector.broadcast %cst_92 : f32 to vector<1x128xf32>
    %217 = arith.maximumf %215, %216 : vector<1x128xf32>
    %cst_93 = arith.constant 9.99999974E-6 : f32
    %218 = vector.broadcast %cst_93 : f32 to vector<1x128xf32>
    %219 = arith.addf %217, %218 : vector<1x128xf32>
    %220 = math.rsqrt %219 : vector<1x128xf32>
    %221 = arith.mulf %202, %220 : vector<1x128xf32>
    %222 = arith.mulf %211, %221 : vector<1x128xf32>
    %223 = arith.subf %203, %222 : vector<1x128xf32>
    %224 = arith.truncf %201 : vector<8x128xf32> to vector<8x128xbf16>
    %225 = arith.truncf %221 : vector<1x128xf32> to vector<1x128xbf16>
    %226 = vector.broadcast %225 : vector<1x128xbf16> to vector<8x128xbf16>
    %227 = arith.mulf %224, %226 : vector<8x128xbf16>
    %228 = arith.truncf %223 : vector<1x128xf32> to vector<1x128xbf16>
    %229 = vector.broadcast %228 : vector<1x128xbf16> to vector<8x128xbf16>
    %230 = arith.addf %227, %229 : vector<8x128xbf16>
    %cst_94 = arith.constant 5.000000e-01 : bf16
    %231 = vector.broadcast %cst_94 : bf16 to vector<8x128xbf16>
    %232 = arith.mulf %231, %230 : vector<8x128xbf16>
    %233 = math.tanh %232 : vector<8x128xbf16>
    %cst_95 = arith.constant 5.000000e-01 : bf16
    %234 = vector.broadcast %cst_95 : bf16 to vector<8x128xbf16>
    %235 = arith.mulf %234, %233 : vector<8x128xbf16>
    %cst_96 = arith.constant 5.000000e-01 : bf16
    %236 = vector.broadcast %cst_96 : bf16 to vector<8x128xbf16>
    %237 = arith.addf %235, %236 : vector<8x128xbf16>
    %c5_97 = arith.constant 5 : index
    %c0_98 = arith.constant 0 : index
    %c0_99 = arith.constant 0 : index
    %238 = vector.load %arg2[%c5_97, %c0_98, %c0_99] : memref<14x128x128xbf16, #tpu.memory_space<vmem>>, vector<1x128x128xbf16>
    %239 = vector.shape_cast %238 : vector<1x128x128xbf16> to vector<128x128xbf16>
    %cst_100 = arith.constant dense<0.000000e+00> : vector<8x128xf32>
    %240 = tpu.matmul %237, %239, %cst_100 {dimension_numbers = #tpu.dot_dimension_numbers<[1], [0], [0], [1], [0, 0, 1, 1], [], []>} : vector<8x128xbf16>, vector<128x128xbf16>, vector<8x128xf32> -> vector<8x128xf32>
    %c6 = arith.constant 6 : index
    %c0_101 = arith.constant 0 : index
    %241 = vector.load %arg3[%c6, %c0_101] : memref<15x128xf32, #tpu.memory_space<vmem>>, vector<1x128xf32>
    %c6_102 = arith.constant 6 : index
    %c0_103 = arith.constant 0 : index
    %242 = vector.load %arg4[%c6_102, %c0_103] : memref<15x128xf32, #tpu.memory_space<vmem>>, vector<1x128xf32>
    %243 = arith.mulf %240, %240 : vector<8x128xf32>
    %244 = tpu.concatenate %240, %243 in 1 : vector<8x128xf32>, vector<8x128xf32> -> vector<8x256xf32>
    %cst_104 = arith.constant dense<0.000000e+00> : vector<256xf32>
    %245 = vector.multi_reduction <add>, %244, %cst_104 [0] : vector<8x256xf32> to vector<256xf32>
    %246 = vector.shape_cast %245 : vector<256xf32> to vector<1x256xf32>
    %247 = vector.extract_strided_slice %246 {offsets = [0, 0], sizes = [1, 128], strides = [1, 1]} : vector<1x256xf32> to vector<1x128xf32>
    %248 = vector.extract_strided_slice %246 {offsets = [0, 128], sizes = [1, 128], strides = [1, 1]} : vector<1x256xf32> to vector<1x128xf32>
    %cst_105 = arith.constant 1.250000e-01 : f32
    %249 = vector.broadcast %cst_105 : f32 to vector<1x128xf32>
    %250 = arith.mulf %247, %249 : vector<1x128xf32>
    %cst_106 = arith.constant 1.250000e-01 : f32
    %251 = vector.broadcast %cst_106 : f32 to vector<1x128xf32>
    %252 = arith.mulf %248, %251 : vector<1x128xf32>
    %253 = arith.mulf %250, %250 : vector<1x128xf32>
    %254 = arith.subf %252, %253 : vector<1x128xf32>
    %cst_107 = arith.constant 0.000000e+00 : f32
    %255 = vector.broadcast %cst_107 : f32 to vector<1x128xf32>
    %256 = arith.maximumf %254, %255 : vector<1x128xf32>
    %cst_108 = arith.constant 9.99999974E-6 : f32
    %257 = vector.broadcast %cst_108 : f32 to vector<1x128xf32>
    %258 = arith.addf %256, %257 : vector<1x128xf32>
    %259 = math.rsqrt %258 : vector<1x128xf32>
    %260 = arith.mulf %241, %259 : vector<1x128xf32>
    %261 = arith.mulf %250, %260 : vector<1x128xf32>
    %262 = arith.subf %242, %261 : vector<1x128xf32>
    %263 = arith.truncf %240 : vector<8x128xf32> to vector<8x128xbf16>
    %264 = arith.truncf %260 : vector<1x128xf32> to vector<1x128xbf16>
    %265 = vector.broadcast %264 : vector<1x128xbf16> to vector<8x128xbf16>
    %266 = arith.mulf %263, %265 : vector<8x128xbf16>
    %267 = arith.truncf %262 : vector<1x128xf32> to vector<1x128xbf16>
    %268 = vector.broadcast %267 : vector<1x128xbf16> to vector<8x128xbf16>
    %269 = arith.addf %266, %268 : vector<8x128xbf16>
    %cst_109 = arith.constant 5.000000e-01 : bf16
    %270 = vector.broadcast %cst_109 : bf16 to vector<8x128xbf16>
    %271 = arith.mulf %270, %269 : vector<8x128xbf16>
    %272 = math.tanh %271 : vector<8x128xbf16>
    %cst_110 = arith.constant 5.000000e-01 : bf16
    %273 = vector.broadcast %cst_110 : bf16 to vector<8x128xbf16>
    %274 = arith.mulf %273, %272 : vector<8x128xbf16>
    %cst_111 = arith.constant 5.000000e-01 : bf16
    %275 = vector.broadcast %cst_111 : bf16 to vector<8x128xbf16>
    %276 = arith.addf %274, %275 : vector<8x128xbf16>
    %c6_112 = arith.constant 6 : index
    %c0_113 = arith.constant 0 : index
    %c0_114 = arith.constant 0 : index
    %277 = vector.load %arg2[%c6_112, %c0_113, %c0_114] : memref<14x128x128xbf16, #tpu.memory_space<vmem>>, vector<1x128x128xbf16>
    %278 = vector.shape_cast %277 : vector<1x128x128xbf16> to vector<128x128xbf16>
    %cst_115 = arith.constant dense<0.000000e+00> : vector<8x128xf32>
    %279 = tpu.matmul %276, %278, %cst_115 {dimension_numbers = #tpu.dot_dimension_numbers<[1], [0], [0], [1], [0, 0, 1, 1], [], []>} : vector<8x128xbf16>, vector<128x128xbf16>, vector<8x128xf32> -> vector<8x128xf32>
    %c7 = arith.constant 7 : index
    %c0_116 = arith.constant 0 : index
    %280 = vector.load %arg3[%c7, %c0_116] : memref<15x128xf32, #tpu.memory_space<vmem>>, vector<1x128xf32>
    %c7_117 = arith.constant 7 : index
    %c0_118 = arith.constant 0 : index
    %281 = vector.load %arg4[%c7_117, %c0_118] : memref<15x128xf32, #tpu.memory_space<vmem>>, vector<1x128xf32>
    %282 = arith.mulf %279, %279 : vector<8x128xf32>
    %283 = tpu.concatenate %279, %282 in 1 : vector<8x128xf32>, vector<8x128xf32> -> vector<8x256xf32>
    %cst_119 = arith.constant dense<0.000000e+00> : vector<256xf32>
    %284 = vector.multi_reduction <add>, %283, %cst_119 [0] : vector<8x256xf32> to vector<256xf32>
    %285 = vector.shape_cast %284 : vector<256xf32> to vector<1x256xf32>
    %286 = vector.extract_strided_slice %285 {offsets = [0, 0], sizes = [1, 128], strides = [1, 1]} : vector<1x256xf32> to vector<1x128xf32>
    %287 = vector.extract_strided_slice %285 {offsets = [0, 128], sizes = [1, 128], strides = [1, 1]} : vector<1x256xf32> to vector<1x128xf32>
    %cst_120 = arith.constant 1.250000e-01 : f32
    %288 = vector.broadcast %cst_120 : f32 to vector<1x128xf32>
    %289 = arith.mulf %286, %288 : vector<1x128xf32>
    %cst_121 = arith.constant 1.250000e-01 : f32
    %290 = vector.broadcast %cst_121 : f32 to vector<1x128xf32>
    %291 = arith.mulf %287, %290 : vector<1x128xf32>
    %292 = arith.mulf %289, %289 : vector<1x128xf32>
    %293 = arith.subf %291, %292 : vector<1x128xf32>
    %cst_122 = arith.constant 0.000000e+00 : f32
    %294 = vector.broadcast %cst_122 : f32 to vector<1x128xf32>
    %295 = arith.maximumf %293, %294 : vector<1x128xf32>
    %cst_123 = arith.constant 9.99999974E-6 : f32
    %296 = vector.broadcast %cst_123 : f32 to vector<1x128xf32>
    %297 = arith.addf %295, %296 : vector<1x128xf32>
    %298 = math.rsqrt %297 : vector<1x128xf32>
    %299 = arith.mulf %280, %298 : vector<1x128xf32>
    %300 = arith.mulf %289, %299 : vector<1x128xf32>
    %301 = arith.subf %281, %300 : vector<1x128xf32>
    %302 = arith.truncf %279 : vector<8x128xf32> to vector<8x128xbf16>
    %303 = arith.truncf %299 : vector<1x128xf32> to vector<1x128xbf16>
    %304 = vector.broadcast %303 : vector<1x128xbf16> to vector<8x128xbf16>
    %305 = arith.mulf %302, %304 : vector<8x128xbf16>
    %306 = arith.truncf %301 : vector<1x128xf32> to vector<1x128xbf16>
    %307 = vector.broadcast %306 : vector<1x128xbf16> to vector<8x128xbf16>
    %308 = arith.addf %305, %307 : vector<8x128xbf16>
    %cst_124 = arith.constant 5.000000e-01 : bf16
    %309 = vector.broadcast %cst_124 : bf16 to vector<8x128xbf16>
    %310 = arith.mulf %309, %308 : vector<8x128xbf16>
    %311 = math.tanh %310 : vector<8x128xbf16>
    %cst_125 = arith.constant 5.000000e-01 : bf16
    %312 = vector.broadcast %cst_125 : bf16 to vector<8x128xbf16>
    %313 = arith.mulf %312, %311 : vector<8x128xbf16>
    %cst_126 = arith.constant 5.000000e-01 : bf16
    %314 = vector.broadcast %cst_126 : bf16 to vector<8x128xbf16>
    %315 = arith.addf %313, %314 : vector<8x128xbf16>
    %c7_127 = arith.constant 7 : index
    %c0_128 = arith.constant 0 : index
    %c0_129 = arith.constant 0 : index
    %316 = vector.load %arg2[%c7_127, %c0_128, %c0_129] : memref<14x128x128xbf16, #tpu.memory_space<vmem>>, vector<1x128x128xbf16>
    %317 = vector.shape_cast %316 : vector<1x128x128xbf16> to vector<128x128xbf16>
    %cst_130 = arith.constant dense<0.000000e+00> : vector<8x128xf32>
    %318 = tpu.matmul %315, %317, %cst_130 {dimension_numbers = #tpu.dot_dimension_numbers<[1], [0], [0], [1], [0, 0, 1, 1], [], []>} : vector<8x128xbf16>, vector<128x128xbf16>, vector<8x128xf32> -> vector<8x128xf32>
    %c8 = arith.constant 8 : index
    %c0_131 = arith.constant 0 : index
    %319 = vector.load %arg3[%c8, %c0_131] : memref<15x128xf32, #tpu.memory_space<vmem>>, vector<1x128xf32>
    %c8_132 = arith.constant 8 : index
    %c0_133 = arith.constant 0 : index
    %320 = vector.load %arg4[%c8_132, %c0_133] : memref<15x128xf32, #tpu.memory_space<vmem>>, vector<1x128xf32>
    %321 = arith.mulf %318, %318 : vector<8x128xf32>
    %322 = tpu.concatenate %318, %321 in 1 : vector<8x128xf32>, vector<8x128xf32> -> vector<8x256xf32>
    %cst_134 = arith.constant dense<0.000000e+00> : vector<256xf32>
    %323 = vector.multi_reduction <add>, %322, %cst_134 [0] : vector<8x256xf32> to vector<256xf32>
    %324 = vector.shape_cast %323 : vector<256xf32> to vector<1x256xf32>
    %325 = vector.extract_strided_slice %324 {offsets = [0, 0], sizes = [1, 128], strides = [1, 1]} : vector<1x256xf32> to vector<1x128xf32>
    %326 = vector.extract_strided_slice %324 {offsets = [0, 128], sizes = [1, 128], strides = [1, 1]} : vector<1x256xf32> to vector<1x128xf32>
    %cst_135 = arith.constant 1.250000e-01 : f32
    %327 = vector.broadcast %cst_135 : f32 to vector<1x128xf32>
    %328 = arith.mulf %325, %327 : vector<1x128xf32>
    %cst_136 = arith.constant 1.250000e-01 : f32
    %329 = vector.broadcast %cst_136 : f32 to vector<1x128xf32>
    %330 = arith.mulf %326, %329 : vector<1x128xf32>
    %331 = arith.mulf %328, %328 : vector<1x128xf32>
    %332 = arith.subf %330, %331 : vector<1x128xf32>
    %cst_137 = arith.constant 0.000000e+00 : f32
    %333 = vector.broadcast %cst_137 : f32 to vector<1x128xf32>
    %334 = arith.maximumf %332, %333 : vector<1x128xf32>
    %cst_138 = arith.constant 9.99999974E-6 : f32
    %335 = vector.broadcast %cst_138 : f32 to vector<1x128xf32>
    %336 = arith.addf %334, %335 : vector<1x128xf32>
    %337 = math.rsqrt %336 : vector<1x128xf32>
    %338 = arith.mulf %319, %337 : vector<1x128xf32>
    %339 = arith.mulf %328, %338 : vector<1x128xf32>
    %340 = arith.subf %320, %339 : vector<1x128xf32>
    %341 = arith.truncf %318 : vector<8x128xf32> to vector<8x128xbf16>
    %342 = arith.truncf %338 : vector<1x128xf32> to vector<1x128xbf16>
    %343 = vector.broadcast %342 : vector<1x128xbf16> to vector<8x128xbf16>
    %344 = arith.mulf %341, %343 : vector<8x128xbf16>
    %345 = arith.truncf %340 : vector<1x128xf32> to vector<1x128xbf16>
    %346 = vector.broadcast %345 : vector<1x128xbf16> to vector<8x128xbf16>
    %347 = arith.addf %344, %346 : vector<8x128xbf16>
    %cst_139 = arith.constant 5.000000e-01 : bf16
    %348 = vector.broadcast %cst_139 : bf16 to vector<8x128xbf16>
    %349 = arith.mulf %348, %347 : vector<8x128xbf16>
    %350 = math.tanh %349 : vector<8x128xbf16>
    %cst_140 = arith.constant 5.000000e-01 : bf16
    %351 = vector.broadcast %cst_140 : bf16 to vector<8x128xbf16>
    %352 = arith.mulf %351, %350 : vector<8x128xbf16>
    %cst_141 = arith.constant 5.000000e-01 : bf16
    %353 = vector.broadcast %cst_141 : bf16 to vector<8x128xbf16>
    %354 = arith.addf %352, %353 : vector<8x128xbf16>
    %c8_142 = arith.constant 8 : index
    %c0_143 = arith.constant 0 : index
    %c0_144 = arith.constant 0 : index
    %355 = vector.load %arg2[%c8_142, %c0_143, %c0_144] : memref<14x128x128xbf16, #tpu.memory_space<vmem>>, vector<1x128x128xbf16>
    %356 = vector.shape_cast %355 : vector<1x128x128xbf16> to vector<128x128xbf16>
    %cst_145 = arith.constant dense<0.000000e+00> : vector<8x128xf32>
    %357 = tpu.matmul %354, %356, %cst_145 {dimension_numbers = #tpu.dot_dimension_numbers<[1], [0], [0], [1], [0, 0, 1, 1], [], []>} : vector<8x128xbf16>, vector<128x128xbf16>, vector<8x128xf32> -> vector<8x128xf32>
    %c9 = arith.constant 9 : index
    %c0_146 = arith.constant 0 : index
    %358 = vector.load %arg3[%c9, %c0_146] : memref<15x128xf32, #tpu.memory_space<vmem>>, vector<1x128xf32>
    %c9_147 = arith.constant 9 : index
    %c0_148 = arith.constant 0 : index
    %359 = vector.load %arg4[%c9_147, %c0_148] : memref<15x128xf32, #tpu.memory_space<vmem>>, vector<1x128xf32>
    %360 = arith.mulf %357, %357 : vector<8x128xf32>
    %361 = tpu.concatenate %357, %360 in 1 : vector<8x128xf32>, vector<8x128xf32> -> vector<8x256xf32>
    %cst_149 = arith.constant dense<0.000000e+00> : vector<256xf32>
    %362 = vector.multi_reduction <add>, %361, %cst_149 [0] : vector<8x256xf32> to vector<256xf32>
    %363 = vector.shape_cast %362 : vector<256xf32> to vector<1x256xf32>
    %364 = vector.extract_strided_slice %363 {offsets = [0, 0], sizes = [1, 128], strides = [1, 1]} : vector<1x256xf32> to vector<1x128xf32>
    %365 = vector.extract_strided_slice %363 {offsets = [0, 128], sizes = [1, 128], strides = [1, 1]} : vector<1x256xf32> to vector<1x128xf32>
    %cst_150 = arith.constant 1.250000e-01 : f32
    %366 = vector.broadcast %cst_150 : f32 to vector<1x128xf32>
    %367 = arith.mulf %364, %366 : vector<1x128xf32>
    %cst_151 = arith.constant 1.250000e-01 : f32
    %368 = vector.broadcast %cst_151 : f32 to vector<1x128xf32>
    %369 = arith.mulf %365, %368 : vector<1x128xf32>
    %370 = arith.mulf %367, %367 : vector<1x128xf32>
    %371 = arith.subf %369, %370 : vector<1x128xf32>
    %cst_152 = arith.constant 0.000000e+00 : f32
    %372 = vector.broadcast %cst_152 : f32 to vector<1x128xf32>
    %373 = arith.maximumf %371, %372 : vector<1x128xf32>
    %cst_153 = arith.constant 9.99999974E-6 : f32
    %374 = vector.broadcast %cst_153 : f32 to vector<1x128xf32>
    %375 = arith.addf %373, %374 : vector<1x128xf32>
    %376 = math.rsqrt %375 : vector<1x128xf32>
    %377 = arith.mulf %358, %376 : vector<1x128xf32>
    %378 = arith.mulf %367, %377 : vector<1x128xf32>
    %379 = arith.subf %359, %378 : vector<1x128xf32>
    %380 = arith.truncf %357 : vector<8x128xf32> to vector<8x128xbf16>
    %381 = arith.truncf %377 : vector<1x128xf32> to vector<1x128xbf16>
    %382 = vector.broadcast %381 : vector<1x128xbf16> to vector<8x128xbf16>
    %383 = arith.mulf %380, %382 : vector<8x128xbf16>
    %384 = arith.truncf %379 : vector<1x128xf32> to vector<1x128xbf16>
    %385 = vector.broadcast %384 : vector<1x128xbf16> to vector<8x128xbf16>
    %386 = arith.addf %383, %385 : vector<8x128xbf16>
    %cst_154 = arith.constant 5.000000e-01 : bf16
    %387 = vector.broadcast %cst_154 : bf16 to vector<8x128xbf16>
    %388 = arith.mulf %387, %386 : vector<8x128xbf16>
    %389 = math.tanh %388 : vector<8x128xbf16>
    %cst_155 = arith.constant 5.000000e-01 : bf16
    %390 = vector.broadcast %cst_155 : bf16 to vector<8x128xbf16>
    %391 = arith.mulf %390, %389 : vector<8x128xbf16>
    %cst_156 = arith.constant 5.000000e-01 : bf16
    %392 = vector.broadcast %cst_156 : bf16 to vector<8x128xbf16>
    %393 = arith.addf %391, %392 : vector<8x128xbf16>
    %c9_157 = arith.constant 9 : index
    %c0_158 = arith.constant 0 : index
    %c0_159 = arith.constant 0 : index
    %394 = vector.load %arg2[%c9_157, %c0_158, %c0_159] : memref<14x128x128xbf16, #tpu.memory_space<vmem>>, vector<1x128x128xbf16>
    %395 = vector.shape_cast %394 : vector<1x128x128xbf16> to vector<128x128xbf16>
    %cst_160 = arith.constant dense<0.000000e+00> : vector<8x128xf32>
    %396 = tpu.matmul %393, %395, %cst_160 {dimension_numbers = #tpu.dot_dimension_numbers<[1], [0], [0], [1], [0, 0, 1, 1], [], []>} : vector<8x128xbf16>, vector<128x128xbf16>, vector<8x128xf32> -> vector<8x128xf32>
    %c10 = arith.constant 10 : index
    %c0_161 = arith.constant 0 : index
    %397 = vector.load %arg3[%c10, %c0_161] : memref<15x128xf32, #tpu.memory_space<vmem>>, vector<1x128xf32>
    %c10_162 = arith.constant 10 : index
    %c0_163 = arith.constant 0 : index
    %398 = vector.load %arg4[%c10_162, %c0_163] : memref<15x128xf32, #tpu.memory_space<vmem>>, vector<1x128xf32>
    %399 = arith.mulf %396, %396 : vector<8x128xf32>
    %400 = tpu.concatenate %396, %399 in 1 : vector<8x128xf32>, vector<8x128xf32> -> vector<8x256xf32>
    %cst_164 = arith.constant dense<0.000000e+00> : vector<256xf32>
    %401 = vector.multi_reduction <add>, %400, %cst_164 [0] : vector<8x256xf32> to vector<256xf32>
    %402 = vector.shape_cast %401 : vector<256xf32> to vector<1x256xf32>
    %403 = vector.extract_strided_slice %402 {offsets = [0, 0], sizes = [1, 128], strides = [1, 1]} : vector<1x256xf32> to vector<1x128xf32>
    %404 = vector.extract_strided_slice %402 {offsets = [0, 128], sizes = [1, 128], strides = [1, 1]} : vector<1x256xf32> to vector<1x128xf32>
    %cst_165 = arith.constant 1.250000e-01 : f32
    %405 = vector.broadcast %cst_165 : f32 to vector<1x128xf32>
    %406 = arith.mulf %403, %405 : vector<1x128xf32>
    %cst_166 = arith.constant 1.250000e-01 : f32
    %407 = vector.broadcast %cst_166 : f32 to vector<1x128xf32>
    %408 = arith.mulf %404, %407 : vector<1x128xf32>
    %409 = arith.mulf %406, %406 : vector<1x128xf32>
    %410 = arith.subf %408, %409 : vector<1x128xf32>
    %cst_167 = arith.constant 0.000000e+00 : f32
    %411 = vector.broadcast %cst_167 : f32 to vector<1x128xf32>
    %412 = arith.maximumf %410, %411 : vector<1x128xf32>
    %cst_168 = arith.constant 9.99999974E-6 : f32
    %413 = vector.broadcast %cst_168 : f32 to vector<1x128xf32>
    %414 = arith.addf %412, %413 : vector<1x128xf32>
    %415 = math.rsqrt %414 : vector<1x128xf32>
    %416 = arith.mulf %397, %415 : vector<1x128xf32>
    %417 = arith.mulf %406, %416 : vector<1x128xf32>
    %418 = arith.subf %398, %417 : vector<1x128xf32>
    %419 = arith.truncf %396 : vector<8x128xf32> to vector<8x128xbf16>
    %420 = arith.truncf %416 : vector<1x128xf32> to vector<1x128xbf16>
    %421 = vector.broadcast %420 : vector<1x128xbf16> to vector<8x128xbf16>
    %422 = arith.mulf %419, %421 : vector<8x128xbf16>
    %423 = arith.truncf %418 : vector<1x128xf32> to vector<1x128xbf16>
    %424 = vector.broadcast %423 : vector<1x128xbf16> to vector<8x128xbf16>
    %425 = arith.addf %422, %424 : vector<8x128xbf16>
    %cst_169 = arith.constant 5.000000e-01 : bf16
    %426 = vector.broadcast %cst_169 : bf16 to vector<8x128xbf16>
    %427 = arith.mulf %426, %425 : vector<8x128xbf16>
    %428 = math.tanh %427 : vector<8x128xbf16>
    %cst_170 = arith.constant 5.000000e-01 : bf16
    %429 = vector.broadcast %cst_170 : bf16 to vector<8x128xbf16>
    %430 = arith.mulf %429, %428 : vector<8x128xbf16>
    %cst_171 = arith.constant 5.000000e-01 : bf16
    %431 = vector.broadcast %cst_171 : bf16 to vector<8x128xbf16>
    %432 = arith.addf %430, %431 : vector<8x128xbf16>
    %c10_172 = arith.constant 10 : index
    %c0_173 = arith.constant 0 : index
    %c0_174 = arith.constant 0 : index
    %433 = vector.load %arg2[%c10_172, %c0_173, %c0_174] : memref<14x128x128xbf16, #tpu.memory_space<vmem>>, vector<1x128x128xbf16>
    %434 = vector.shape_cast %433 : vector<1x128x128xbf16> to vector<128x128xbf16>
    %cst_175 = arith.constant dense<0.000000e+00> : vector<8x128xf32>
    %435 = tpu.matmul %432, %434, %cst_175 {dimension_numbers = #tpu.dot_dimension_numbers<[1], [0], [0], [1], [0, 0, 1, 1], [], []>} : vector<8x128xbf16>, vector<128x128xbf16>, vector<8x128xf32> -> vector<8x128xf32>
    %c11 = arith.constant 11 : index
    %c0_176 = arith.constant 0 : index
    %436 = vector.load %arg3[%c11, %c0_176] : memref<15x128xf32, #tpu.memory_space<vmem>>, vector<1x128xf32>
    %c11_177 = arith.constant 11 : index
    %c0_178 = arith.constant 0 : index
    %437 = vector.load %arg4[%c11_177, %c0_178] : memref<15x128xf32, #tpu.memory_space<vmem>>, vector<1x128xf32>
    %438 = arith.mulf %435, %435 : vector<8x128xf32>
    %439 = tpu.concatenate %435, %438 in 1 : vector<8x128xf32>, vector<8x128xf32> -> vector<8x256xf32>
    %cst_179 = arith.constant dense<0.000000e+00> : vector<256xf32>
    %440 = vector.multi_reduction <add>, %439, %cst_179 [0] : vector<8x256xf32> to vector<256xf32>
    %441 = vector.shape_cast %440 : vector<256xf32> to vector<1x256xf32>
    %442 = vector.extract_strided_slice %441 {offsets = [0, 0], sizes = [1, 128], strides = [1, 1]} : vector<1x256xf32> to vector<1x128xf32>
    %443 = vector.extract_strided_slice %441 {offsets = [0, 128], sizes = [1, 128], strides = [1, 1]} : vector<1x256xf32> to vector<1x128xf32>
    %cst_180 = arith.constant 1.250000e-01 : f32
    %444 = vector.broadcast %cst_180 : f32 to vector<1x128xf32>
    %445 = arith.mulf %442, %444 : vector<1x128xf32>
    %cst_181 = arith.constant 1.250000e-01 : f32
    %446 = vector.broadcast %cst_181 : f32 to vector<1x128xf32>
    %447 = arith.mulf %443, %446 : vector<1x128xf32>
    %448 = arith.mulf %445, %445 : vector<1x128xf32>
    %449 = arith.subf %447, %448 : vector<1x128xf32>
    %cst_182 = arith.constant 0.000000e+00 : f32
    %450 = vector.broadcast %cst_182 : f32 to vector<1x128xf32>
    %451 = arith.maximumf %449, %450 : vector<1x128xf32>
    %cst_183 = arith.constant 9.99999974E-6 : f32
    %452 = vector.broadcast %cst_183 : f32 to vector<1x128xf32>
    %453 = arith.addf %451, %452 : vector<1x128xf32>
    %454 = math.rsqrt %453 : vector<1x128xf32>
    %455 = arith.mulf %436, %454 : vector<1x128xf32>
    %456 = arith.mulf %445, %455 : vector<1x128xf32>
    %457 = arith.subf %437, %456 : vector<1x128xf32>
    %458 = arith.truncf %435 : vector<8x128xf32> to vector<8x128xbf16>
    %459 = arith.truncf %455 : vector<1x128xf32> to vector<1x128xbf16>
    %460 = vector.broadcast %459 : vector<1x128xbf16> to vector<8x128xbf16>
    %461 = arith.mulf %458, %460 : vector<8x128xbf16>
    %462 = arith.truncf %457 : vector<1x128xf32> to vector<1x128xbf16>
    %463 = vector.broadcast %462 : vector<1x128xbf16> to vector<8x128xbf16>
    %464 = arith.addf %461, %463 : vector<8x128xbf16>
    %cst_184 = arith.constant 5.000000e-01 : bf16
    %465 = vector.broadcast %cst_184 : bf16 to vector<8x128xbf16>
    %466 = arith.mulf %465, %464 : vector<8x128xbf16>
    %467 = math.tanh %466 : vector<8x128xbf16>
    %cst_185 = arith.constant 5.000000e-01 : bf16
    %468 = vector.broadcast %cst_185 : bf16 to vector<8x128xbf16>
    %469 = arith.mulf %468, %467 : vector<8x128xbf16>
    %cst_186 = arith.constant 5.000000e-01 : bf16
    %470 = vector.broadcast %cst_186 : bf16 to vector<8x128xbf16>
    %471 = arith.addf %469, %470 : vector<8x128xbf16>
    %c11_187 = arith.constant 11 : index
    %c0_188 = arith.constant 0 : index
    %c0_189 = arith.constant 0 : index
    %472 = vector.load %arg2[%c11_187, %c0_188, %c0_189] : memref<14x128x128xbf16, #tpu.memory_space<vmem>>, vector<1x128x128xbf16>
    %473 = vector.shape_cast %472 : vector<1x128x128xbf16> to vector<128x128xbf16>
    %cst_190 = arith.constant dense<0.000000e+00> : vector<8x128xf32>
    %474 = tpu.matmul %471, %473, %cst_190 {dimension_numbers = #tpu.dot_dimension_numbers<[1], [0], [0], [1], [0, 0, 1, 1], [], []>} : vector<8x128xbf16>, vector<128x128xbf16>, vector<8x128xf32> -> vector<8x128xf32>
    %c12 = arith.constant 12 : index
    %c0_191 = arith.constant 0 : index
    %475 = vector.load %arg3[%c12, %c0_191] : memref<15x128xf32, #tpu.memory_space<vmem>>, vector<1x128xf32>
    %c12_192 = arith.constant 12 : index
    %c0_193 = arith.constant 0 : index
    %476 = vector.load %arg4[%c12_192, %c0_193] : memref<15x128xf32, #tpu.memory_space<vmem>>, vector<1x128xf32>
    %477 = arith.mulf %474, %474 : vector<8x128xf32>
    %478 = tpu.concatenate %474, %477 in 1 : vector<8x128xf32>, vector<8x128xf32> -> vector<8x256xf32>
    %cst_194 = arith.constant dense<0.000000e+00> : vector<256xf32>
    %479 = vector.multi_reduction <add>, %478, %cst_194 [0] : vector<8x256xf32> to vector<256xf32>
    %480 = vector.shape_cast %479 : vector<256xf32> to vector<1x256xf32>
    %481 = vector.extract_strided_slice %480 {offsets = [0, 0], sizes = [1, 128], strides = [1, 1]} : vector<1x256xf32> to vector<1x128xf32>
    %482 = vector.extract_strided_slice %480 {offsets = [0, 128], sizes = [1, 128], strides = [1, 1]} : vector<1x256xf32> to vector<1x128xf32>
    %cst_195 = arith.constant 1.250000e-01 : f32
    %483 = vector.broadcast %cst_195 : f32 to vector<1x128xf32>
    %484 = arith.mulf %481, %483 : vector<1x128xf32>
    %cst_196 = arith.constant 1.250000e-01 : f32
    %485 = vector.broadcast %cst_196 : f32 to vector<1x128xf32>
    %486 = arith.mulf %482, %485 : vector<1x128xf32>
    %487 = arith.mulf %484, %484 : vector<1x128xf32>
    %488 = arith.subf %486, %487 : vector<1x128xf32>
    %cst_197 = arith.constant 0.000000e+00 : f32
    %489 = vector.broadcast %cst_197 : f32 to vector<1x128xf32>
    %490 = arith.maximumf %488, %489 : vector<1x128xf32>
    %cst_198 = arith.constant 9.99999974E-6 : f32
    %491 = vector.broadcast %cst_198 : f32 to vector<1x128xf32>
    %492 = arith.addf %490, %491 : vector<1x128xf32>
    %493 = math.rsqrt %492 : vector<1x128xf32>
    %494 = arith.mulf %475, %493 : vector<1x128xf32>
    %495 = arith.mulf %484, %494 : vector<1x128xf32>
    %496 = arith.subf %476, %495 : vector<1x128xf32>
    %497 = arith.truncf %474 : vector<8x128xf32> to vector<8x128xbf16>
    %498 = arith.truncf %494 : vector<1x128xf32> to vector<1x128xbf16>
    %499 = vector.broadcast %498 : vector<1x128xbf16> to vector<8x128xbf16>
    %500 = arith.mulf %497, %499 : vector<8x128xbf16>
    %501 = arith.truncf %496 : vector<1x128xf32> to vector<1x128xbf16>
    %502 = vector.broadcast %501 : vector<1x128xbf16> to vector<8x128xbf16>
    %503 = arith.addf %500, %502 : vector<8x128xbf16>
    %cst_199 = arith.constant 5.000000e-01 : bf16
    %504 = vector.broadcast %cst_199 : bf16 to vector<8x128xbf16>
    %505 = arith.mulf %504, %503 : vector<8x128xbf16>
    %506 = math.tanh %505 : vector<8x128xbf16>
    %cst_200 = arith.constant 5.000000e-01 : bf16
    %507 = vector.broadcast %cst_200 : bf16 to vector<8x128xbf16>
    %508 = arith.mulf %507, %506 : vector<8x128xbf16>
    %cst_201 = arith.constant 5.000000e-01 : bf16
    %509 = vector.broadcast %cst_201 : bf16 to vector<8x128xbf16>
    %510 = arith.addf %508, %509 : vector<8x128xbf16>
    %c12_202 = arith.constant 12 : index
    %c0_203 = arith.constant 0 : index
    %c0_204 = arith.constant 0 : index
    %511 = vector.load %arg2[%c12_202, %c0_203, %c0_204] : memref<14x128x128xbf16, #tpu.memory_space<vmem>>, vector<1x128x128xbf16>
    %512 = vector.shape_cast %511 : vector<1x128x128xbf16> to vector<128x128xbf16>
    %cst_205 = arith.constant dense<0.000000e+00> : vector<8x128xf32>
    %513 = tpu.matmul %510, %512, %cst_205 {dimension_numbers = #tpu.dot_dimension_numbers<[1], [0], [0], [1], [0, 0, 1, 1], [], []>} : vector<8x128xbf16>, vector<128x128xbf16>, vector<8x128xf32> -> vector<8x128xf32>
    %c13 = arith.constant 13 : index
    %c0_206 = arith.constant 0 : index
    %514 = vector.load %arg3[%c13, %c0_206] : memref<15x128xf32, #tpu.memory_space<vmem>>, vector<1x128xf32>
    %c13_207 = arith.constant 13 : index
    %c0_208 = arith.constant 0 : index
    %515 = vector.load %arg4[%c13_207, %c0_208] : memref<15x128xf32, #tpu.memory_space<vmem>>, vector<1x128xf32>
    %516 = arith.mulf %513, %513 : vector<8x128xf32>
    %517 = tpu.concatenate %513, %516 in 1 : vector<8x128xf32>, vector<8x128xf32> -> vector<8x256xf32>
    %cst_209 = arith.constant dense<0.000000e+00> : vector<256xf32>
    %518 = vector.multi_reduction <add>, %517, %cst_209 [0] : vector<8x256xf32> to vector<256xf32>
    %519 = vector.shape_cast %518 : vector<256xf32> to vector<1x256xf32>
    %520 = vector.extract_strided_slice %519 {offsets = [0, 0], sizes = [1, 128], strides = [1, 1]} : vector<1x256xf32> to vector<1x128xf32>
    %521 = vector.extract_strided_slice %519 {offsets = [0, 128], sizes = [1, 128], strides = [1, 1]} : vector<1x256xf32> to vector<1x128xf32>
    %cst_210 = arith.constant 1.250000e-01 : f32
    %522 = vector.broadcast %cst_210 : f32 to vector<1x128xf32>
    %523 = arith.mulf %520, %522 : vector<1x128xf32>
    %cst_211 = arith.constant 1.250000e-01 : f32
    %524 = vector.broadcast %cst_211 : f32 to vector<1x128xf32>
    %525 = arith.mulf %521, %524 : vector<1x128xf32>
    %526 = arith.mulf %523, %523 : vector<1x128xf32>
    %527 = arith.subf %525, %526 : vector<1x128xf32>
    %cst_212 = arith.constant 0.000000e+00 : f32
    %528 = vector.broadcast %cst_212 : f32 to vector<1x128xf32>
    %529 = arith.maximumf %527, %528 : vector<1x128xf32>
    %cst_213 = arith.constant 9.99999974E-6 : f32
    %530 = vector.broadcast %cst_213 : f32 to vector<1x128xf32>
    %531 = arith.addf %529, %530 : vector<1x128xf32>
    %532 = math.rsqrt %531 : vector<1x128xf32>
    %533 = arith.mulf %514, %532 : vector<1x128xf32>
    %534 = arith.mulf %523, %533 : vector<1x128xf32>
    %535 = arith.subf %515, %534 : vector<1x128xf32>
    %536 = arith.truncf %513 : vector<8x128xf32> to vector<8x128xbf16>
    %537 = arith.truncf %533 : vector<1x128xf32> to vector<1x128xbf16>
    %538 = vector.broadcast %537 : vector<1x128xbf16> to vector<8x128xbf16>
    %539 = arith.mulf %536, %538 : vector<8x128xbf16>
    %540 = arith.truncf %535 : vector<1x128xf32> to vector<1x128xbf16>
    %541 = vector.broadcast %540 : vector<1x128xbf16> to vector<8x128xbf16>
    %542 = arith.addf %539, %541 : vector<8x128xbf16>
    %cst_214 = arith.constant 5.000000e-01 : bf16
    %543 = vector.broadcast %cst_214 : bf16 to vector<8x128xbf16>
    %544 = arith.mulf %543, %542 : vector<8x128xbf16>
    %545 = math.tanh %544 : vector<8x128xbf16>
    %cst_215 = arith.constant 5.000000e-01 : bf16
    %546 = vector.broadcast %cst_215 : bf16 to vector<8x128xbf16>
    %547 = arith.mulf %546, %545 : vector<8x128xbf16>
    %cst_216 = arith.constant 5.000000e-01 : bf16
    %548 = vector.broadcast %cst_216 : bf16 to vector<8x128xbf16>
    %549 = arith.addf %547, %548 : vector<8x128xbf16>
    %c13_217 = arith.constant 13 : index
    %c0_218 = arith.constant 0 : index
    %c0_219 = arith.constant 0 : index
    %550 = vector.load %arg2[%c13_217, %c0_218, %c0_219] : memref<14x128x128xbf16, #tpu.memory_space<vmem>>, vector<1x128x128xbf16>
    %551 = vector.shape_cast %550 : vector<1x128x128xbf16> to vector<128x128xbf16>
    %cst_220 = arith.constant dense<0.000000e+00> : vector<8x128xf32>
    %552 = tpu.matmul %549, %551, %cst_220 {dimension_numbers = #tpu.dot_dimension_numbers<[1], [0], [0], [1], [0, 0, 1, 1], [], []>} : vector<8x128xbf16>, vector<128x128xbf16>, vector<8x128xf32> -> vector<8x128xf32>
    %c14 = arith.constant 14 : index
    %c0_221 = arith.constant 0 : index
    %553 = vector.load %arg3[%c14, %c0_221] : memref<15x128xf32, #tpu.memory_space<vmem>>, vector<1x128xf32>
    %c14_222 = arith.constant 14 : index
    %c0_223 = arith.constant 0 : index
    %554 = vector.load %arg4[%c14_222, %c0_223] : memref<15x128xf32, #tpu.memory_space<vmem>>, vector<1x128xf32>
    %555 = arith.mulf %552, %552 : vector<8x128xf32>
    %556 = tpu.concatenate %552, %555 in 1 : vector<8x128xf32>, vector<8x128xf32> -> vector<8x256xf32>
    %cst_224 = arith.constant dense<0.000000e+00> : vector<256xf32>
    %557 = vector.multi_reduction <add>, %556, %cst_224 [0] : vector<8x256xf32> to vector<256xf32>
    %558 = vector.shape_cast %557 : vector<256xf32> to vector<1x256xf32>
    %559 = vector.extract_strided_slice %558 {offsets = [0, 0], sizes = [1, 128], strides = [1, 1]} : vector<1x256xf32> to vector<1x128xf32>
    %560 = vector.extract_strided_slice %558 {offsets = [0, 128], sizes = [1, 128], strides = [1, 1]} : vector<1x256xf32> to vector<1x128xf32>
    %cst_225 = arith.constant 1.250000e-01 : f32
    %561 = vector.broadcast %cst_225 : f32 to vector<1x128xf32>
    %562 = arith.mulf %559, %561 : vector<1x128xf32>
    %cst_226 = arith.constant 1.250000e-01 : f32
    %563 = vector.broadcast %cst_226 : f32 to vector<1x128xf32>
    %564 = arith.mulf %560, %563 : vector<1x128xf32>
    %565 = arith.mulf %562, %562 : vector<1x128xf32>
    %566 = arith.subf %564, %565 : vector<1x128xf32>
    %cst_227 = arith.constant 0.000000e+00 : f32
    %567 = vector.broadcast %cst_227 : f32 to vector<1x128xf32>
    %568 = arith.maximumf %566, %567 : vector<1x128xf32>
    %cst_228 = arith.constant 9.99999974E-6 : f32
    %569 = vector.broadcast %cst_228 : f32 to vector<1x128xf32>
    %570 = arith.addf %568, %569 : vector<1x128xf32>
    %571 = math.rsqrt %570 : vector<1x128xf32>
    %572 = arith.mulf %553, %571 : vector<1x128xf32>
    %573 = arith.mulf %562, %572 : vector<1x128xf32>
    %574 = arith.subf %554, %573 : vector<1x128xf32>
    %575 = arith.truncf %552 : vector<8x128xf32> to vector<8x128xbf16>
    %576 = arith.truncf %572 : vector<1x128xf32> to vector<1x128xbf16>
    %577 = vector.broadcast %576 : vector<1x128xbf16> to vector<8x128xbf16>
    %578 = arith.mulf %575, %577 : vector<8x128xbf16>
    %579 = arith.truncf %574 : vector<1x128xf32> to vector<1x128xbf16>
    %580 = vector.broadcast %579 : vector<1x128xbf16> to vector<8x128xbf16>
    %581 = arith.addf %578, %580 : vector<8x128xbf16>
    %cst_229 = arith.constant 5.000000e-01 : bf16
    %582 = vector.broadcast %cst_229 : bf16 to vector<8x128xbf16>
    %583 = arith.mulf %582, %581 : vector<8x128xbf16>
    %584 = math.tanh %583 : vector<8x128xbf16>
    %cst_230 = arith.constant 5.000000e-01 : bf16
    %585 = vector.broadcast %cst_230 : bf16 to vector<8x128xbf16>
    %586 = arith.mulf %585, %584 : vector<8x128xbf16>
    %cst_231 = arith.constant 5.000000e-01 : bf16
    %587 = vector.broadcast %cst_231 : bf16 to vector<8x128xbf16>
    %588 = arith.addf %586, %587 : vector<8x128xbf16>
    %c0_232 = arith.constant 0 : index
    %c0_233 = arith.constant 0 : index
    %589 = vector.load %arg5[%c0_232, %c0_233] : memref<128x512xbf16, #tpu.memory_space<vmem>>, vector<128x512xbf16>
    %cst_234 = arith.constant dense<0.000000e+00> : vector<8x512xf32>
    %590 = tpu.matmul %588, %589, %cst_234 {dimension_numbers = #tpu.dot_dimension_numbers<[1], [0], [0], [1], [0, 0, 1, 1], [], []>} : vector<8x128xbf16>, vector<128x512xbf16>, vector<8x512xf32> -> vector<8x512xf32>
    %c0_235 = arith.constant 0 : index
    %c0_236 = arith.constant 0 : index
    %591 = vector.load %arg6[%c0_235, %c0_236] : memref<1x512xf32, #tpu.memory_space<vmem>>, vector<1x512xf32>
    %592 = vector.broadcast %591 : vector<1x512xf32> to vector<8x512xf32>
    %593 = arith.addf %590, %592 : vector<8x512xf32>
    %594 = vector.extract_strided_slice %593 {offsets = [0, 0], sizes = [8, 400], strides = [1, 1]} : vector<8x512xf32> to vector<8x400xf32>
    %cst_237 = arith.constant 5.000000e-01 : f32
    %595 = vector.broadcast %cst_237 : f32 to vector<8x400xf32>
    %596 = arith.mulf %595, %594 : vector<8x400xf32>
    %597 = math.tanh %596 : vector<8x400xf32>
    %cst_238 = arith.constant 5.000000e-01 : f32
    %598 = vector.broadcast %cst_238 : f32 to vector<8x400xf32>
    %599 = arith.mulf %598, %597 : vector<8x400xf32>
    %cst_239 = arith.constant 5.000000e-01 : f32
    %600 = vector.broadcast %cst_239 : f32 to vector<8x400xf32>
    %601 = arith.addf %599, %600 : vector<8x400xf32>
    %c0_240 = arith.constant 0 : index
    %c0_241 = arith.constant 0 : index
    %602 = vector.load %arg7[%c0_240, %c0_241] : memref<8x400xf32, #tpu.memory_space<vmem>>, vector<8x400xf32>
    tpu.vector_store %arg7[%c0_240, %c0_241], %601 {strides = array<i32>} : memref<8x400xf32, #tpu.memory_space<vmem>>, vector<8x400xf32>,
    return
  }
}

</mosaic_0001>

<bundles_post_ra>
// kernel: vgg_forward.1
= control target key start
LH: loop header
LB: loop body
LE: loop exit
PB: predicated region body
PF: predicated region fallthrough
CT: control target
= control target key end

     0   :  { %12 = vsyncpa [#allocation4], 0  ;;  %s3601_s24 = smov [#allocation3]   ;;  %s4093_s0 = inlined_call_operand.vmem [shape: bf16[8,200], index: 0, kind: input, shape index: {}]   ;;  %s4094_s1 = inlined_call_operand.vmem [shape: bf16[256,128], index: 1, kind: input, shape index: {}]   ;;  %s4095_s2 = inlined_call_operand.hbm [shape: bf16[14,128,128], index: 2, kind: input, shape index: {}]   ;;  %s4096_s3 = inlined_call_operand.vmem [shape: f32[15,128], index: 3, kind: input, shape index: {}]   ;;  %s4097_s4 = inlined_call_operand.vmem [shape: f32[15,128], index: 4, kind: input, shape index: {}]   ;;  %s4098_s5 = inlined_call_operand.vmem [shape: bf16[128,512], index: 5, kind: input, shape index: {}]   ;;  %s4099_s6 = inlined_call_operand.vmem [shape: f32[1,512], index: 6, kind: input, shape index: {}]   ;;  %s4100_s7 = inlined_call_operand.vmem [shape: f32[8,400], index: 7, kind: output, shape index: {}]  }
   0x1   :  { %s22_s25 = sshll.u32 %s3601_s24, 4  ;;  %s3577_s28 = scalar_lea.hbm %s4095_s2, 14336  ;;  %s23_s25 = int_to_ptr.vmem [resolvable:$true] %s22_s25 }
   0x2   :  { %p3578_p0 = scmp.ne.s32.totalorder %s4095_s2, %s3577_s28  ;;  %p3581_p1 = scmp.lt.u32.totalorder %s3577_s28, %s4095_s2 }
   0x4   :  { %p3583_p2 = pnand %p3581_p1, %p3578_p0 }
   0x6   :  { %3586 = shalt.err (!%p3583_p2)
}
   0x7   :  { %s3587_s10 = scalar_lea.vmem %s23_s25, 14336  ;;  %p3592_p4 = scmp.lt.s32.totalorder %s23_s25, %s23_s25 }
   0x8   :  { %p3588_p3 = scmp.ne.s32.totalorder %s23_s25, %s3587_s10  ;;  %p3593_p5 = scmp.lt.s32.totalorder %s3587_s10, %s3587_s10 }
   0xa   :  { %p3594_p6 = por %p3593_p5, %p3592_p4 }
   0xc   :  { %p3595_p7 = pnand %p3594_p6, %p3588_p3 }
   0xe   :  { %3598 = shalt.err (!%p3595_p7)
}
   0xf   :  { %s3602_s11 = smov 64   ;;  %s3603_s12 = smov 4  }
  0x10   :  { %28 = dma.hbm_to_vmem [thread:$0]  %s4095_s2, 14336, %s23_s25, [#allocation4], %s3602_s11, %s3602_s11, %s3603_s12  }
  0x11   :  { %3599 = dma.done.wait [#allocation4], 14336  }
  0x12   :  { %3600 = vsyncadd [#allocation4], 4294952960  ;;  %v3604_v0 = vmov 0   ;;  %v3331_v1 = vld [vmem:[%s4094_s1 + $0x40] sm:$0xff]   ;;  %v3333_v3 = vld [vmem:[%s4094_s1 + $0x48] sm:$0xff]   ;;  %vm44_vm0 = vcmask 1043456   ;;  %v254_v54 = vlaneseq }
  0x13   :  { %42 = vst [vmem:[#allocation2] sm:$0xff] %v3604_v0  ;;  %v3332_v2 = vld [vmem:[%s4094_s1] sm:$0xff]   ;;  %2897 = vmatprep.subr.bf16.mxu0 %v3331_v1  ;;  %v3334_v4 = vld [vmem:[%s4094_s1 + $0x8] sm:$0xff]   ;;  %v3335_v5 = vld [vmem:[%s4094_s1 + $0x50] sm:$0xff]   ;;  %vm45_vm1 = vcmask 588804   ;;  %v3605_v22 = vmov 0.0  }
  0x14   :  { %2898 = vmatpush3.bf16.msra.mxu0 %v3332_v2  ;;  %v3336_v6 = vld [vmem:[%s4094_s1 + $0x10] sm:$0xff]   ;;  %v3337_v7 = vld [vmem:[%s4094_s1 + $0x58] sm:$0xff]   ;;  %v3339_v9 = vld [vmem:[%s4094_s1 + $0x60] sm:$0xff]   ;;  %3045 = vmatprep.subr.bf16.mxu1 %v3605_v22  ;;  %vm3606_vm3 = vmmov 0   ;;  %v3728_v56 = vshrl.u32 %v254_v54, 7  ;;  %vm2728_vm4 = vcmask 130048  }
  0x15   :  { %2899 = vmatprep.subr.bf16.mxu0 %v3333_v3  ;;  %v3338_v8 = vld [vmem:[%s4094_s1 + $0x18] sm:$0xff]   ;;  %vm46_vm2 = vmor %vm45_vm1, %vm44_vm0  ;;  %v3340_v10 = vld [vmem:[%s4094_s1 + $0x20] sm:$0xff]   ;;  %3061 = vmatprep.mubr.msk.bf16.mxu1 %vm3606_vm3, %v3605_v22 }
  0x16   :  { %v3341_v11 = vld [vmem:[%s4094_s1 + $0x68] sm:$0xff]   ;;  %v43_v12 = vld [vmem:[%s4093_s0] sm:$0xff]  ;;  %v3343_v14 = vld [vmem:[%s4094_s1 + $0x70] sm:$0xff]   ;;  %v3734_v62 = vsub.s32 0, %v3728_v56 }
  0x17   :  { %v3342_v13 = vld [vmem:[%s4094_s1 + $0x28] sm:$0xff]   ;;  %47 = vst.msk [vmem:[#allocation2] sm:$0xff] %vm46_vm2, %v43_v12  ;;  %v3344_v15 = vld [vmem:[%s4094_s1 + $0x30] sm:$0xff]   ;;  %v3345_v16 = vld [vmem:[%s4094_s1 + $0x78] sm:$0xff]  }
  0x18   :  { %2900 = vmatpush3.bf16.msra.mxu0 %v3334_v4  ;;  %v3346_v18 = vld [vmem:[%s4094_s1 + $0x38] sm:$0xff]   ;;  %v3349_v21 = vld [vmem:[#allocation3] sm:$0xff]   ;;  %v3350_v23 = vld [vmem:[#allocation3 + $0x8] sm:$0xff]  }
  0x19   :  { %2901 = vmatprep.subr.bf16.mxu0 %v3335_v5  ;;  %3046 = vmatpush3.bf16.msra.mxu1 %v3349_v21  ;;  %v3351_v24 = vld [vmem:[#allocation3 + $0x10] sm:$0xff]   ;;  %v3352_v25 = vld [vmem:[#allocation3 + $0x18] sm:$0xff]   ;;  %v3353_v26 = vld [vmem:[#allocation3 + $0x20] sm:$0xff]  }
  0x1a   :  { %3047 = vmatprep.subr.bf16.mxu1 %v3605_v22  ;;  %v3354_v27 = vld [vmem:[#allocation3 + $0x28] sm:$0xff]   ;;  %v3355_v28 = vld [vmem:[#allocation3 + $0x30] sm:$0xff]   ;;  %v3356_v29 = vld [vmem:[#allocation3 + $0x38] sm:$0xff]  }
  0x1b   :  { %v224_v55 = vld [vmem:[%s4096_s3] sm:$0x1] }
  0x1c   :  { %2902 = vmatpush3.bf16.msra.mxu0 %v3336_v6  ;;  %v225_v59 = vld [vmem:[%s4097_s4] sm:$0x1] }
  0x1d   :  { %2903 = vmatprep.subr.bf16.mxu0 %v3337_v7  ;;  %3048 = vmatpush3.bf16.msra.mxu1 %v3350_v23 }
  0x1e   :  { %v48_v17 = vld [vmem:[#allocation2] sm:$0xff]  ;;  %3049 = vmatprep.subr.bf16.mxu1 %v3605_v22 }
  0x1f   :  { %v2736_v19 = vcombine.high %v48_v17, %v48_v17  ;;  %v2735_v20 = vcombine.low %v48_v17, %v48_v17  ;;  %v3361_v17 = vld [vmem:[#allocation3 + $0x60] sm:$0xff]  }
  0x20   :  { %2904 = vmatpush3.bf16.msra.mxu0 %v3338_v8 }
  0x21   :  { %2905 = vmatprep.subr.bf16.mxu0 %v3339_v9  ;;  %216 = vmatprep.mubr.bf16.mxu0 %v2736_v19  ;;  %v3363_v19 = vld [vmem:[#allocation3 + $0x70] sm:$0xff]  }
  0x22   :  { %3050 = vmatpush3.bf16.msra.mxu1 %v3351_v24 }
  0x23   :  { %3051 = vmatprep.subr.bf16.mxu1 %v3605_v22 }
  0x24   :  { %2906 = vmatpush3.bf16.msra.mxu0 %v3340_v10 }
  0x25   :  { %2907 = vmatprep.subr.bf16.mxu0 %v3341_v11 }
  0x26   :  { %3052 = vmatpush3.bf16.msra.mxu1 %v3352_v25 }
  0x27   :  { %3053 = vmatprep.subr.bf16.mxu1 %v3605_v22 }
  0x28   :  { %2908 = vmatpush3.bf16.msra.mxu0 %v3342_v13  ;;  %v3357_v13 = vld [vmem:[#allocation3 + $0x40] sm:$0xff]  }
  0x29   :  { %2909 = vmatprep.subr.bf16.mxu0 %v3343_v14  ;;  %v3358_v14 = vld [vmem:[#allocation3 + $0x48] sm:$0xff]  }
  0x2a   :  { %3054 = vmatpush3.bf16.msra.mxu1 %v3353_v26 }
  0x2b   :  { %3055 = vmatprep.subr.bf16.mxu1 %v3605_v22 }
  0x2c   :  { %2910 = vmatpush3.bf16.msra.mxu0 %v3344_v15  ;;  %v3359_v15 = vld [vmem:[#allocation3 + $0x50] sm:$0xff]  }
  0x2d   :  { %2911 = vmatprep.subr.bf16.mxu0 %v3345_v16  ;;  %v3360_v16 = vld [vmem:[#allocation3 + $0x58] sm:$0xff]  }
  0x2e   :  { %3056 = vmatpush3.bf16.msra.mxu1 %v3354_v27 }
  0x2f   :  { %3057 = vmatprep.subr.bf16.mxu1 %v3605_v22 }
  0x30   :  { %2912 = vmatpush3.bf16.msra.mxu0 %v3346_v18  ;;  %v3362_v18 = vld [vmem:[#allocation3 + $0x68] sm:$0xff]  }
  0x31   :  { %3065 = vmatprep.subr.bf16.mxu0 %v3605_v22 }
  0x32   :  { %3058 = vmatpush3.bf16.msra.mxu1 %v3355_v28 }
  0x33   :  { %217 = vmatmul.mubr.bf16.vlgmr.msra.gmra.mrb[0].mxu0 %v2735_v20  ;;  %3059 = vmatprep.subr.bf16.mxu1 %v3605_v22  ;;  %v3364_v20 = vld [vmem:[#allocation3 + $0x78] sm:$0xff]  }
  0x34   :  { %3081 = vmatprep.mubr.msk.bf16.mxu0 %vm3606_vm3, %v3605_v22  ;;  %3066 = vmatpush3.bf16.msra.mxu0 %v3357_v13 }
  0x35   :  { %3067 = vmatprep.subr.bf16.mxu0 %v3605_v22 }
  0x36   :  { %3060 = vmatpush3.bf16.msra.mxu1 %v3356_v29 }
  0x37   :  { %3085 = vmatprep.subr.bf16.mxu1 %v3605_v22 }
  0x38   :  { %3068 = vmatpush3.bf16.msra.mxu0 %v3358_v14 }
  0x39   :  { %3069 = vmatprep.subr.bf16.mxu0 %v3605_v22 }
  0x3c   :  { %3070 = vmatpush3.bf16.msra.mxu0 %v3359_v15 }
  0x3d   :  { %3071 = vmatprep.subr.bf16.mxu0 %v3605_v22 }
  0x40   :  { %3072 = vmatpush3.bf16.msra.mxu0 %v3360_v16 }
  0x41   :  { %3073 = vmatprep.subr.bf16.mxu0 %v3605_v22 }
  0x44   :  { %3074 = vmatpush3.bf16.msra.mxu0 %v3361_v17 }
  0x45   :  { %3075 = vmatprep.subr.bf16.mxu0 %v3605_v22 }
  0x48   :  { %3076 = vmatpush3.bf16.msra.mxu0 %v3362_v18 }
  0x49   :  { %3077 = vmatprep.subr.bf16.mxu0 %v3605_v22 }
  0x4c   :  { %3078 = vmatpush3.bf16.msra.mxu0 %v3363_v19 }
  0x4d   :  { %3079 = vmatprep.subr.bf16.mxu0 %v3605_v22 }
  0x50   :  { %3080 = vmatpush3.bf16.msra.mxu0 %v3364_v20 }
  0x51   :  { %3105 = vmatprep.subr.bf16.mxu0 %v3605_v22 }
 0x106   :  { %v2913_v30 = vpop.f32.mrb[0].mxu0 }
 0x107   :  { %v2914_v31 = vpop.f32.mrb[1].mxu0 }
 0x108   :  { %v2915_v32 = vadd.f32 %v2914_v31, %v2913_v30  ;;  %v2916_v33 = vpop.f32.mrb[2].mxu0 }
 0x109   :  { %v2917_v34 = vpop.f32.mrb[3].mxu0 }
 0x10a   :  { %v226_v35 = vmul.f32 %v2915_v32, %v2915_v32  ;;  %v227_v36 = vrot.slane %v2915_v32, 4  ;;  %v249_v4 = vpack.c.bf16 %v2915_v32, %v2915_v32 }
 0x10c   :  { %v228_v37 = vadd.f32 %v2915_v32, %v227_v36  ;;  %v233_v38 = vrot.slane %v226_v35, 4 }
 0x10e   :  { %v229_v39 = vrot.slane %v228_v37, 2  ;;  %v234_v40 = vadd.f32 %v233_v38, %v226_v35 }
 0x110   :  { %v230_v41 = vadd.f32 %v229_v39, %v228_v37  ;;  %v235_v42 = vrot.slane %v234_v40, 2 }
 0x112   :  { %v231_v43 = vrot.slane %v230_v41, 1  ;;  %v236_v44 = vadd.f32 %v235_v42, %v234_v40 }
 0x114   :  { %v232_v45 = vadd.f32 %v231_v43, %v230_v41  ;;  %v237_v46 = vrot.slane %v236_v44, 1 }
 0x116   :  { %v238_v47 = vadd.f32 %v237_v46, %v236_v44  ;;  %v239_v48 = vmul.f32 0.125, %v232_v45  ;;  %v376_v45 = vld [vmem:[%s4096_s3 + $0x1] sm:$0x1] }
 0x118   :  { %v240_v49 = vmul.f32 0.125, %v238_v47  ;;  %v241_v50 = vmul.f32 %v239_v48, %v239_v48 }
 0x11a   :  { %v242_v51 = vsub.f32 %v240_v49, %v241_v50 }
 0x11c   :  { %v243_v52 = vmax.f32 %v242_v51, 0.0 }
 0x11e   :  { %v244_v53 = vadd.f32 1e-05, %v243_v52 }
 0x120   :  { %3509 = vrsqrt.f32 %v244_v53 }
 0x12a   :  { %v3510_v57 = vpop.eup %3509 }
 0x12b   :  { %v246_v58 = vmul.f32 %v3510_v57, %v224_v55 }
 0x12d   :  { %v247_v60 = vmul.f32 %v246_v58, %v239_v48  ;;  %v250_v61 = vpack.c.bf16 %v246_v58, %v246_v58  ;;  %v377_v48 = vld [vmem:[%s4097_s4 + $0x1] sm:$0x1] }
 0x12f   :  { %v248_v63 = vsub.f32 %v225_v59, %v247_v60  ;;  %v252_v1 = vpack.i.b16 %v250_v61, %v250_v61 }
 0x131   :  { %v257_v2 = vrot.slane %v252_v1, %v3734_v62  ;;  %v259_v3 = vpack.c.bf16 %v248_v63, %v248_v63 }
 0x133   :  { %v261_v5 = vpack.i.b16 %v259_v3, %v259_v3  ;;  %v258_v6 = vmul.bf16 %v257_v2, %v249_v4  ;;  %v3365_v3 = vld [vmem:[#allocation3 + $0x80] sm:$0xff]   ;;  %v3366_v4 = vld [vmem:[#allocation3 + $0x88] sm:$0xff]  }
 0x135   :  { %v266_v7 = vrot.slane %v261_v5, %v3734_v62  ;;  %v3367_v5 = vld [vmem:[#allocation3 + $0x90] sm:$0xff]  }
 0x137   :  { %v267_v8 = vadd.bf16 %v266_v7, %v258_v6  ;;  %v3368_v6 = vld [vmem:[#allocation3 + $0x98] sm:$0xff]   ;;  %v3369_v7 = vld [vmem:[#allocation3 + $0xa0] sm:$0xff]  }
 0x139   :  { %v268_v9 = vmul.bf16 1056980736, %v267_v8  ;;  %v3370_v8 = vld [vmem:[#allocation3 + $0xa8] sm:$0xff]  }
 0x13b   :  { %3511 = vtanh.bf16 %v268_v9  ;;  %v3371_v9 = vld [vmem:[#allocation3 + $0xb0] sm:$0xff]  }
 0x146   :  { %v3512_v10 = vpop.eup %3511 }
 0x147   :  { %v270_v11 = vmul.bf16 1056980736, %v3512_v10  ;;  %v3372_v10 = vld [vmem:[#allocation3 + $0xb8] sm:$0xff]  }
 0x149   :  { %v271_v12 = vadd.bf16 1056980736, %v270_v11 }
 0x14b   :  { %3062 = vmatmul.mubr.bf16.vlgmr.msra.gmra.mrb[0].mxu1 %v271_v12 }
 0x14c   :  { %3101 = vmatprep.mubr.msk.bf16.mxu1 %vm3606_vm3, %v3605_v22  ;;  %3086 = vmatpush3.bf16.msra.mxu1 %v3365_v3 }
 0x14d   :  { %3087 = vmatprep.subr.bf16.mxu1 %v3605_v22 }
 0x150   :  { %3088 = vmatpush3.bf16.msra.mxu1 %v3366_v4 }
 0x151   :  { %3089 = vmatprep.subr.bf16.mxu1 %v3605_v22 }
 0x154   :  { %3090 = vmatpush3.bf16.msra.mxu1 %v3367_v5 }
 0x155   :  { %3091 = vmatprep.subr.bf16.mxu1 %v3605_v22 }
 0x158   :  { %3092 = vmatpush3.bf16.msra.mxu1 %v3368_v6 }
 0x159   :  { %3093 = vmatprep.subr.bf16.mxu1 %v3605_v22 }
 0x15c   :  { %3094 = vmatpush3.bf16.msra.mxu1 %v3369_v7 }
 0x15d   :  { %3095 = vmatprep.subr.bf16.mxu1 %v3605_v22 }
 0x160   :  { %3096 = vmatpush3.bf16.msra.mxu1 %v3370_v8 }
 0x161   :  { %3097 = vmatprep.subr.bf16.mxu1 %v3605_v22 }
 0x164   :  { %3098 = vmatpush3.bf16.msra.mxu1 %v3371_v9 }
 0x165   :  { %3099 = vmatprep.subr.bf16.mxu1 %v3605_v22 }
 0x168   :  { %3100 = vmatpush3.bf16.msra.mxu1 %v3372_v10 }
 0x169   :  { %3125 = vmatprep.subr.bf16.mxu1 %v3605_v22 }
 0x21e   :  { %v370_v21 = vpop.f32.mrb[0].mxu1 }
 0x21f   :  { %v378_v23 = vmul.f32 %v370_v21, %v370_v21  ;;  %v379_v24 = vrot.slane %v370_v21, 4  ;;  %v3063_v25 = vpop.f32.mrb[1].mxu1  ;;  %v401_v55 = vpack.c.bf16 %v370_v21, %v370_v21 }
 0x220   :  { %v373_v26 = vpop.f32.mrb[2].mxu1 }
 0x221   :  { %v380_v27 = vadd.f32 %v379_v24, %v370_v21  ;;  %v385_v28 = vrot.slane %v378_v23, 4  ;;  %v3064_v29 = vpop.f32.mrb[3].mxu1 }
 0x223   :  { %v381_v30 = vrot.slane %v380_v27, 2  ;;  %v386_v31 = vadd.f32 %v385_v28, %v378_v23 }
 0x225   :  { %v382_v32 = vadd.f32 %v381_v30, %v380_v27  ;;  %v387_v33 = vrot.slane %v386_v31, 2 }
 0x227   :  { %v383_v34 = vrot.slane %v382_v32, 1  ;;  %v388_v35 = vadd.f32 %v387_v33, %v386_v31 }
 0x229   :  { %v384_v36 = vadd.f32 %v383_v34, %v382_v32  ;;  %v389_v37 = vrot.slane %v388_v35, 1 }
 0x22b   :  { %v390_v38 = vadd.f32 %v389_v37, %v388_v35  ;;  %v391_v39 = vmul.f32 0.125, %v384_v36  ;;  %v529_v35 = vld [vmem:[%s4096_s3 + $0x2] sm:$0x1] }
 0x22d   :  { %v392_v40 = vmul.f32 0.125, %v390_v38  ;;  %v393_v41 = vmul.f32 %v391_v39, %v391_v39  ;;  %v530_v38 = vld [vmem:[%s4097_s4 + $0x2] sm:$0x1] }
 0x22f   :  { %v394_v42 = vsub.f32 %v392_v40, %v393_v41 }
 0x231   :  { %v395_v43 = vmax.f32 %v394_v42, 0.0 }
 0x233   :  { %v396_v44 = vadd.f32 1e-05, %v395_v43 }
 0x235   :  { %3513 = vrsqrt.f32 %v396_v44 }
 0x23f   :  { %v3514_v46 = vpop.eup %3513 }
 0x240   :  { %v398_v47 = vmul.f32 %v3514_v46, %v376_v45 }
 0x242   :  { %v399_v49 = vmul.f32 %v398_v47, %v391_v39  ;;  %v402_v50 = vpack.c.bf16 %v398_v47, %v398_v47 }
 0x244   :  { %v400_v51 = vsub.f32 %v377_v48, %v399_v49  ;;  %v404_v52 = vpack.i.b16 %v402_v50, %v402_v50 }
 0x246   :  { %v409_v53 = vrot.slane %v404_v52, %v3734_v62  ;;  %v411_v54 = vpack.c.bf16 %v400_v51, %v400_v51 }
 0x248   :  { %v413_v57 = vpack.i.b16 %v411_v54, %v411_v54  ;;  %v410_v58 = vmul.bf16 %v409_v53, %v401_v55  ;;  %v3373_v54 = vld [vmem:[#allocation3 + $0xc0] sm:$0xff]   ;;  %v3374_v55 = vld [vmem:[#allocation3 + $0xc8] sm:$0xff]  }
 0x24a   :  { %v418_v59 = vrot.slane %v413_v57, %v3734_v62  ;;  %v3375_v57 = vld [vmem:[#allocation3 + $0xd0] sm:$0xff]  }
 0x24c   :  { %v419_v60 = vadd.bf16 %v418_v59, %v410_v58  ;;  %v3376_v58 = vld [vmem:[#allocation3 + $0xd8] sm:$0xff]   ;;  %v3377_v59 = vld [vmem:[#allocation3 + $0xe0] sm:$0xff]  }
 0x24e   :  { %v420_v61 = vmul.bf16 1056980736, %v419_v60  ;;  %v3378_v60 = vld [vmem:[#allocation3 + $0xe8] sm:$0xff]  }
 0x250   :  { %3515 = vtanh.bf16 %v420_v61  ;;  %v3379_v61 = vld [vmem:[#allocation3 + $0xf0] sm:$0xff]  }
 0x25b   :  { %v3516_v63 = vpop.eup %3515 }
 0x25c   :  { %v422_v1 = vmul.bf16 1056980736, %v3516_v63  ;;  %v3380_v63 = vld [vmem:[#allocation3 + $0xf8] sm:$0xff]  }
 0x25e   :  { %v423_v2 = vadd.bf16 1056980736, %v422_v1 }
 0x260   :  { %3082 = vmatmul.mubr.bf16.vlgmr.msra.gmra.mrb[4].mxu0 %v423_v2 }
 0x261   :  { %3121 = vmatprep.mubr.msk.bf16.mxu0 %vm3606_vm3, %v3605_v22  ;;  %3106 = vmatpush3.bf16.msra.mxu0 %v3373_v54 }
 0x262   :  { %3107 = vmatprep.subr.bf16.mxu0 %v3605_v22 }
 0x265   :  { %3108 = vmatpush3.bf16.msra.mxu0 %v3374_v55 }
 0x266   :  { %3109 = vmatprep.subr.bf16.mxu0 %v3605_v22 }
 0x269   :  { %3110 = vmatpush3.bf16.msra.mxu0 %v3375_v57 }
 0x26a   :  { %3111 = vmatprep.subr.bf16.mxu0 %v3605_v22 }
 0x26d   :  { %3112 = vmatpush3.bf16.msra.mxu0 %v3376_v58 }
 0x26e   :  { %3113 = vmatprep.subr.bf16.mxu0 %v3605_v22 }
 0x271   :  { %3114 = vmatpush3.bf16.msra.mxu0 %v3377_v59 }
 0x272   :  { %3115 = vmatprep.subr.bf16.mxu0 %v3605_v22 }
 0x275   :  { %3116 = vmatpush3.bf16.msra.mxu0 %v3378_v60 }
 0x276   :  { %3117 = vmatprep.subr.bf16.mxu0 %v3605_v22 }
 0x279   :  { %3118 = vmatpush3.bf16.msra.mxu0 %v3379_v61 }
 0x27a   :  { %3119 = vmatprep.subr.bf16.mxu0 %v3605_v22 }
 0x27d   :  { %3120 = vmatpush3.bf16.msra.mxu0 %v3380_v63 }
 0x27e   :  { %3145 = vmatprep.subr.bf16.mxu0 %v3605_v22 }
 0x333   :  { %v523_v11 = vpop.f32.mrb[4].mxu0 }
 0x334   :  { %v531_v12 = vmul.f32 %v523_v11, %v523_v11  ;;  %v532_v13 = vrot.slane %v523_v11, 4  ;;  %v3083_v14 = vpop.f32.mrb[5].mxu0  ;;  %v554_v45 = vpack.c.bf16 %v523_v11, %v523_v11 }
 0x335   :  { %v526_v15 = vpop.f32.mrb[6].mxu0 }
 0x336   :  { %v533_v16 = vadd.f32 %v532_v13, %v523_v11  ;;  %v538_v17 = vrot.slane %v531_v12, 4  ;;  %v3084_v18 = vpop.f32.mrb[7].mxu0 }
 0x338   :  { %v534_v19 = vrot.slane %v533_v16, 2  ;;  %v539_v20 = vadd.f32 %v538_v17, %v531_v12 }
 0x33a   :  { %v535_v21 = vadd.f32 %v534_v19, %v533_v16  ;;  %v540_v23 = vrot.slane %v539_v20, 2 }
 0x33c   :  { %v536_v24 = vrot.slane %v535_v21, 1  ;;  %v541_v25 = vadd.f32 %v540_v23, %v539_v20 }
 0x33e   :  { %v537_v26 = vadd.f32 %v536_v24, %v535_v21  ;;  %v542_v27 = vrot.slane %v541_v25, 1 }
 0x340   :  { %v543_v28 = vadd.f32 %v542_v27, %v541_v25  ;;  %v544_v29 = vmul.f32 0.125, %v537_v26  ;;  %v682_v25 = vld [vmem:[%s4096_s3 + $0x3] sm:$0x1] }
 0x342   :  { %v545_v30 = vmul.f32 0.125, %v543_v28  ;;  %v546_v31 = vmul.f32 %v544_v29, %v544_v29  ;;  %v683_v28 = vld [vmem:[%s4097_s4 + $0x3] sm:$0x1] }
 0x344   :  { %v547_v32 = vsub.f32 %v545_v30, %v546_v31 }
 0x346   :  { %v548_v33 = vmax.f32 %v547_v32, 0.0 }
 0x348   :  { %v549_v34 = vadd.f32 1e-05, %v548_v33 }
 0x34a   :  { %3517 = vrsqrt.f32 %v549_v34 }
 0x354   :  { %v3518_v36 = vpop.eup %3517 }
 0x355   :  { %v551_v37 = vmul.f32 %v3518_v36, %v529_v35 }
 0x357   :  { %v552_v39 = vmul.f32 %v551_v37, %v544_v29  ;;  %v555_v40 = vpack.c.bf16 %v551_v37, %v551_v37 }
 0x359   :  { %v553_v41 = vsub.f32 %v530_v38, %v552_v39  ;;  %v557_v42 = vpack.i.b16 %v555_v40, %v555_v40 }
 0x35b   :  { %v562_v43 = vrot.slane %v557_v42, %v3734_v62  ;;  %v564_v44 = vpack.c.bf16 %v553_v41, %v553_v41 }
 0x35d   :  { %v566_v46 = vpack.i.b16 %v564_v44, %v564_v44  ;;  %v563_v47 = vmul.bf16 %v562_v43, %v554_v45  ;;  %v3381_v44 = vld [vmem:[#allocation3 + $0x100] sm:$0xff]   ;;  %v3382_v45 = vld [vmem:[#allocation3 + $0x108] sm:$0xff]  }
 0x35f   :  { %v571_v48 = vrot.slane %v566_v46, %v3734_v62  ;;  %v3383_v46 = vld [vmem:[#allocation3 + $0x110] sm:$0xff]  }
 0x361   :  { %v572_v49 = vadd.bf16 %v571_v48, %v563_v47  ;;  %v3384_v47 = vld [vmem:[#allocation3 + $0x118] sm:$0xff]   ;;  %v3385_v48 = vld [vmem:[#allocation3 + $0x120] sm:$0xff]  }
 0x363   :  { %v573_v50 = vmul.bf16 1056980736, %v572_v49  ;;  %v3386_v49 = vld [vmem:[#allocation3 + $0x128] sm:$0xff]  }
 0x365   :  { %3519 = vtanh.bf16 %v573_v50  ;;  %v3387_v50 = vld [vmem:[#allocation3 + $0x130] sm:$0xff]  }
 0x370   :  { %v3520_v51 = vpop.eup %3519 }
 0x371   :  { %v575_v52 = vmul.bf16 1056980736, %v3520_v51  ;;  %v3388_v51 = vld [vmem:[#allocation3 + $0x138] sm:$0xff]  }
 0x373   :  { %v576_v53 = vadd.bf16 1056980736, %v575_v52 }
 0x375   :  { %3102 = vmatmul.mubr.bf16.vlgmr.msra.gmra.mrb[4].mxu1 %v576_v53 }
 0x376   :  { %3141 = vmatprep.mubr.msk.bf16.mxu1 %vm3606_vm3, %v3605_v22  ;;  %3126 = vmatpush3.bf16.msra.mxu1 %v3381_v44 }
 0x377   :  { %3127 = vmatprep.subr.bf16.mxu1 %v3605_v22 }
 0x37a   :  { %3128 = vmatpush3.bf16.msra.mxu1 %v3382_v45 }
 0x37b   :  { %3129 = vmatprep.subr.bf16.mxu1 %v3605_v22 }
 0x37e   :  { %3130 = vmatpush3.bf16.msra.mxu1 %v3383_v46 }
 0x37f   :  { %3131 = vmatprep.subr.bf16.mxu1 %v3605_v22 }
 0x382   :  { %3132 = vmatpush3.bf16.msra.mxu1 %v3384_v47 }
 0x383   :  { %3133 = vmatprep.subr.bf16.mxu1 %v3605_v22 }
 0x386   :  { %3134 = vmatpush3.bf16.msra.mxu1 %v3385_v48 }
 0x387   :  { %3135 = vmatprep.subr.bf16.mxu1 %v3605_v22 }
 0x38a   :  { %3136 = vmatpush3.bf16.msra.mxu1 %v3386_v49 }
 0x38b   :  { %3137 = vmatprep.subr.bf16.mxu1 %v3605_v22 }
 0x38e   :  { %3138 = vmatpush3.bf16.msra.mxu1 %v3387_v50 }
 0x38f   :  { %3139 = vmatprep.subr.bf16.mxu1 %v3605_v22 }
 0x392   :  { %3140 = vmatpush3.bf16.msra.mxu1 %v3388_v51 }
 0x393   :  { %3165 = vmatprep.subr.bf16.mxu1 %v3605_v22 }
 0x448   :  { %v676_v1 = vpop.f32.mrb[4].mxu1 }
 0x449   :  { %v684_v2 = vmul.f32 %v676_v1, %v676_v1  ;;  %v685_v3 = vrot.slane %v676_v1, 4  ;;  %v3103_v4 = vpop.f32.mrb[5].mxu1  ;;  %v707_v35 = vpack.c.bf16 %v676_v1, %v676_v1 }
 0x44a   :  { %v679_v5 = vpop.f32.mrb[6].mxu1 }
 0x44b   :  { %v686_v6 = vadd.f32 %v685_v3, %v676_v1  ;;  %v691_v7 = vrot.slane %v684_v2, 4  ;;  %v3104_v8 = vpop.f32.mrb[7].mxu1 }
 0x44d   :  { %v687_v9 = vrot.slane %v686_v6, 2  ;;  %v692_v10 = vadd.f32 %v691_v7, %v684_v2 }
 0x44f   :  { %v688_v11 = vadd.f32 %v687_v9, %v686_v6  ;;  %v693_v12 = vrot.slane %v692_v10, 2 }
 0x451   :  { %v689_v13 = vrot.slane %v688_v11, 1  ;;  %v694_v14 = vadd.f32 %v693_v12, %v692_v10 }
 0x453   :  { %v690_v15 = vadd.f32 %v689_v13, %v688_v11  ;;  %v695_v16 = vrot.slane %v694_v14, 1 }
 0x455   :  { %v696_v17 = vadd.f32 %v695_v16, %v694_v14  ;;  %v697_v18 = vmul.f32 0.125, %v690_v15  ;;  %v835_v14 = vld [vmem:[%s4096_s3 + $0x4] sm:$0x1] }
 0x457   :  { %v698_v19 = vmul.f32 0.125, %v696_v17  ;;  %v699_v20 = vmul.f32 %v697_v18, %v697_v18  ;;  %v836_v17 = vld [vmem:[%s4097_s4 + $0x4] sm:$0x1] }
 0x459   :  { %v700_v21 = vsub.f32 %v698_v19, %v699_v20 }
 0x45b   :  { %v701_v23 = vmax.f32 %v700_v21, 0.0 }
 0x45d   :  { %v702_v24 = vadd.f32 1e-05, %v701_v23 }
 0x45f   :  { %3521 = vrsqrt.f32 %v702_v24 }
 0x469   :  { %v3522_v26 = vpop.eup %3521 }
 0x46a   :  { %v704_v27 = vmul.f32 %v3522_v26, %v682_v25 }
 0x46c   :  { %v705_v29 = vmul.f32 %v704_v27, %v697_v18  ;;  %v708_v30 = vpack.c.bf16 %v704_v27, %v704_v27 }
 0x46e   :  { %v706_v31 = vsub.f32 %v683_v28, %v705_v29  ;;  %v710_v32 = vpack.i.b16 %v708_v30, %v708_v30 }
 0x470   :  { %v715_v33 = vrot.slane %v710_v32, %v3734_v62  ;;  %v717_v34 = vpack.c.bf16 %v706_v31, %v706_v31 }
 0x472   :  { %v719_v36 = vpack.i.b16 %v717_v34, %v717_v34  ;;  %v716_v37 = vmul.bf16 %v715_v33, %v707_v35  ;;  %v3389_v34 = vld [vmem:[#allocation3 + $0x140] sm:$0xff]   ;;  %v3390_v35 = vld [vmem:[#allocation3 + $0x148] sm:$0xff]  }
 0x474   :  { %v724_v38 = vrot.slane %v719_v36, %v3734_v62  ;;  %v3391_v36 = vld [vmem:[#allocation3 + $0x150] sm:$0xff]  }
 0x476   :  { %v725_v39 = vadd.bf16 %v724_v38, %v716_v37  ;;  %v3392_v37 = vld [vmem:[#allocation3 + $0x158] sm:$0xff]   ;;  %v3393_v38 = vld [vmem:[#allocation3 + $0x160] sm:$0xff]  }
 0x478   :  { %v726_v40 = vmul.bf16 1056980736, %v725_v39  ;;  %v3394_v39 = vld [vmem:[#allocation3 + $0x168] sm:$0xff]  }
 0x47a   :  { %3523 = vtanh.bf16 %v726_v40  ;;  %v3395_v40 = vld [vmem:[#allocation3 + $0x170] sm:$0xff]  }
 0x485   :  { %v3524_v41 = vpop.eup %3523 }
 0x486   :  { %v728_v42 = vmul.bf16 1056980736, %v3524_v41  ;;  %v3396_v41 = vld [vmem:[#allocation3 + $0x178] sm:$0xff]  }
 0x488   :  { %v729_v43 = vadd.bf16 1056980736, %v728_v42 }
 0x48a   :  { %3122 = vmatmul.mubr.bf16.vlgmr.msra.gmra.mrb[8].mxu0 %v729_v43 }
 0x48b   :  { %3161 = vmatprep.mubr.msk.bf16.mxu0 %vm3606_vm3, %v3605_v22  ;;  %3146 = vmatpush3.bf16.msra.mxu0 %v3389_v34 }
 0x48c   :  { %3147 = vmatprep.subr.bf16.mxu0 %v3605_v22 }
 0x48f   :  { %3148 = vmatpush3.bf16.msra.mxu0 %v3390_v35 }
 0x490   :  { %3149 = vmatprep.subr.bf16.mxu0 %v3605_v22 }
 0x493   :  { %3150 = vmatpush3.bf16.msra.mxu0 %v3391_v36 }
 0x494   :  { %3151 = vmatprep.subr.bf16.mxu0 %v3605_v22 }
 0x497   :  { %3152 = vmatpush3.bf16.msra.mxu0 %v3392_v37 }
 0x498   :  { %3153 = vmatprep.subr.bf16.mxu0 %v3605_v22 }
 0x49b   :  { %3154 = vmatpush3.bf16.msra.mxu0 %v3393_v38 }
 0x49c   :  { %3155 = vmatprep.subr.bf16.mxu0 %v3605_v22 }
 0x49f   :  { %3156 = vmatpush3.bf16.msra.mxu0 %v3394_v39 }
 0x4a0   :  { %3157 = vmatprep.subr.bf16.mxu0 %v3605_v22 }
 0x4a3   :  { %3158 = vmatpush3.bf16.msra.mxu0 %v3395_v40 }
 0x4a4   :  { %3159 = vmatprep.subr.bf16.mxu0 %v3605_v22 }
 0x4a7   :  { %3160 = vmatpush3.bf16.msra.mxu0 %v3396_v41 }
 0x4a8   :  { %3185 = vmatprep.subr.bf16.mxu0 %v3605_v22 }
 0x55d   :  { %v829_v52 = vpop.f32.mrb[8].mxu0 }
 0x55e   :  { %v837_v53 = vmul.f32 %v829_v52, %v829_v52  ;;  %v838_v54 = vrot.slane %v829_v52, 4  ;;  %v3123_v55 = vpop.f32.mrb[9].mxu0  ;;  %v860_v25 = vpack.c.bf16 %v829_v52, %v829_v52 }
 0x55f   :  { %v832_v57 = vpop.f32.mrb[10].mxu0 }
 0x560   :  { %v839_v58 = vadd.f32 %v838_v54, %v829_v52  ;;  %v844_v59 = vrot.slane %v837_v53, 4  ;;  %v3124_v60 = vpop.f32.mrb[11].mxu0 }
 0x562   :  { %v840_v61 = vrot.slane %v839_v58, 2  ;;  %v845_v63 = vadd.f32 %v844_v59, %v837_v53 }
 0x564   :  { %v841_v1 = vadd.f32 %v840_v61, %v839_v58  ;;  %v846_v2 = vrot.slane %v845_v63, 2 }
 0x566   :  { %v842_v3 = vrot.slane %v841_v1, 1  ;;  %v847_v4 = vadd.f32 %v846_v2, %v845_v63 }
 0x568   :  { %v843_v5 = vadd.f32 %v842_v3, %v841_v1  ;;  %v848_v6 = vrot.slane %v847_v4, 1 }
 0x56a   :  { %v849_v7 = vadd.f32 %v848_v6, %v847_v4  ;;  %v850_v8 = vmul.f32 0.125, %v843_v5  ;;  %v988_v4 = vld [vmem:[%s4096_s3 + $0x5] sm:$0x1] }
 0x56c   :  { %v851_v9 = vmul.f32 0.125, %v849_v7  ;;  %v852_v10 = vmul.f32 %v850_v8, %v850_v8  ;;  %v989_v7 = vld [vmem:[%s4097_s4 + $0x5] sm:$0x1] }
 0x56e   :  { %v853_v11 = vsub.f32 %v851_v9, %v852_v10 }
 0x570   :  { %v854_v12 = vmax.f32 %v853_v11, 0.0 }
 0x572   :  { %v855_v13 = vadd.f32 1e-05, %v854_v12 }
 0x574   :  { %3525 = vrsqrt.f32 %v855_v13 }
 0x57e   :  { %v3526_v15 = vpop.eup %3525 }
 0x57f   :  { %v857_v16 = vmul.f32 %v3526_v15, %v835_v14 }
 0x581   :  { %v858_v18 = vmul.f32 %v857_v16, %v850_v8  ;;  %v861_v19 = vpack.c.bf16 %v857_v16, %v857_v16 }
 0x583   :  { %v859_v20 = vsub.f32 %v836_v17, %v858_v18  ;;  %v863_v21 = vpack.i.b16 %v861_v19, %v861_v19 }
 0x585   :  { %v868_v23 = vrot.slane %v863_v21, %v3734_v62  ;;  %v870_v24 = vpack.c.bf16 %v859_v20, %v859_v20 }
 0x587   :  { %v872_v26 = vpack.i.b16 %v870_v24, %v870_v24  ;;  %v869_v27 = vmul.bf16 %v868_v23, %v860_v25  ;;  %v3397_v24 = vld [vmem:[#allocation3 + $0x180] sm:$0xff]   ;;  %v3398_v25 = vld [vmem:[#allocation3 + $0x188] sm:$0xff]  }
 0x589   :  { %v877_v28 = vrot.slane %v872_v26, %v3734_v62  ;;  %v3399_v26 = vld [vmem:[#allocation3 + $0x190] sm:$0xff]  }
 0x58b   :  { %v878_v29 = vadd.bf16 %v877_v28, %v869_v27  ;;  %v3400_v27 = vld [vmem:[#allocation3 + $0x198] sm:$0xff]   ;;  %v3401_v28 = vld [vmem:[#allocation3 + $0x1a0] sm:$0xff]  }
 0x58d   :  { %v879_v30 = vmul.bf16 1056980736, %v878_v29  ;;  %v3402_v29 = vld [vmem:[#allocation3 + $0x1a8] sm:$0xff]  }
 0x58f   :  { %3527 = vtanh.bf16 %v879_v30  ;;  %v3403_v30 = vld [vmem:[#allocation3 + $0x1b0] sm:$0xff]  }
 0x59a   :  { %v3528_v31 = vpop.eup %3527 }
 0x59b   :  { %v881_v32 = vmul.bf16 1056980736, %v3528_v31  ;;  %v3404_v31 = vld [vmem:[#allocation3 + $0x1b8] sm:$0xff]  }
 0x59d   :  { %v882_v33 = vadd.bf16 1056980736, %v881_v32 }
 0x59f   :  { %3142 = vmatmul.mubr.bf16.vlgmr.msra.gmra.mrb[8].mxu1 %v882_v33 }
 0x5a0   :  { %3181 = vmatprep.mubr.msk.bf16.mxu1 %vm3606_vm3, %v3605_v22  ;;  %3166 = vmatpush3.bf16.msra.mxu1 %v3397_v24 }
 0x5a1   :  { %3167 = vmatprep.subr.bf16.mxu1 %v3605_v22 }
 0x5a4   :  { %3168 = vmatpush3.bf16.msra.mxu1 %v3398_v25 }
 0x5a5   :  { %3169 = vmatprep.subr.bf16.mxu1 %v3605_v22 }
 0x5a8   :  { %3170 = vmatpush3.bf16.msra.mxu1 %v3399_v26 }
 0x5a9   :  { %3171 = vmatprep.subr.bf16.mxu1 %v3605_v22 }
 0x5ac   :  { %3172 = vmatpush3.bf16.msra.mxu1 %v3400_v27 }
 0x5ad   :  { %3173 = vmatprep.subr.bf16.mxu1 %v3605_v22 }
 0x5b0   :  { %3174 = vmatpush3.bf16.msra.mxu1 %v3401_v28 }
 0x5b1   :  { %3175 = vmatprep.subr.bf16.mxu1 %v3605_v22 }
 0x5b4   :  { %3176 = vmatpush3.bf16.msra.mxu1 %v3402_v29 }
 0x5b5   :  { %3177 = vmatprep.subr.bf16.mxu1 %v3605_v22 }
 0x5b8   :  { %3178 = vmatpush3.bf16.msra.mxu1 %v3403_v30 }
 0x5b9   :  { %3179 = vmatprep.subr.bf16.mxu1 %v3605_v22 }
 0x5bc   :  { %3180 = vmatpush3.bf16.msra.mxu1 %v3404_v31 }
 0x5bd   :  { %3205 = vmatprep.subr.bf16.mxu1 %v3605_v22 }
 0x672   :  { %v982_v42 = vpop.f32.mrb[8].mxu1 }
 0x673   :  { %v990_v43 = vmul.f32 %v982_v42, %v982_v42  ;;  %v991_v44 = vrot.slane %v982_v42, 4  ;;  %v3143_v45 = vpop.f32.mrb[9].mxu1  ;;  %v1013_v14 = vpack.c.bf16 %v982_v42, %v982_v42 }
 0x674   :  { %v985_v46 = vpop.f32.mrb[10].mxu1 }
 0x675   :  { %v992_v47 = vadd.f32 %v991_v44, %v982_v42  ;;  %v997_v48 = vrot.slane %v990_v43, 4  ;;  %v3144_v49 = vpop.f32.mrb[11].mxu1 }
 0x677   :  { %v993_v50 = vrot.slane %v992_v47, 2  ;;  %v998_v51 = vadd.f32 %v997_v48, %v990_v43 }
 0x679   :  { %v994_v52 = vadd.f32 %v993_v50, %v992_v47  ;;  %v999_v53 = vrot.slane %v998_v51, 2 }
 0x67b   :  { %v995_v54 = vrot.slane %v994_v52, 1  ;;  %v1000_v55 = vadd.f32 %v999_v53, %v998_v51 }
 0x67d   :  { %v996_v57 = vadd.f32 %v995_v54, %v994_v52  ;;  %v1001_v58 = vrot.slane %v1000_v55, 1 }
 0x67f   :  { %v1002_v59 = vadd.f32 %v1001_v58, %v1000_v55  ;;  %v1003_v60 = vmul.f32 0.125, %v996_v57  ;;  %v1141_v55 = vld [vmem:[%s4096_s3 + $0x6] sm:$0x1] }
 0x681   :  { %v1004_v61 = vmul.f32 0.125, %v1002_v59  ;;  %v1005_v63 = vmul.f32 %v1003_v60, %v1003_v60  ;;  %v1142_v59 = vld [vmem:[%s4097_s4 + $0x6] sm:$0x1] }
 0x683   :  { %v1006_v1 = vsub.f32 %v1004_v61, %v1005_v63 }
 0x685   :  { %v1007_v2 = vmax.f32 %v1006_v1, 0.0 }
 0x687   :  { %v1008_v3 = vadd.f32 1e-05, %v1007_v2 }
 0x689   :  { %3529 = vrsqrt.f32 %v1008_v3 }
 0x693   :  { %v3530_v5 = vpop.eup %3529 }
 0x694   :  { %v1010_v6 = vmul.f32 %v3530_v5, %v988_v4 }
 0x696   :  { %v1011_v8 = vmul.f32 %v1010_v6, %v1003_v60  ;;  %v1014_v9 = vpack.c.bf16 %v1010_v6, %v1010_v6 }
 0x698   :  { %v1012_v10 = vsub.f32 %v989_v7, %v1011_v8  ;;  %v1016_v11 = vpack.i.b16 %v1014_v9, %v1014_v9 }
 0x69a   :  { %v1021_v12 = vrot.slane %v1016_v11, %v3734_v62  ;;  %v1023_v13 = vpack.c.bf16 %v1012_v10, %v1012_v10 }
 0x69c   :  { %v1025_v15 = vpack.i.b16 %v1023_v13, %v1023_v13  ;;  %v1022_v16 = vmul.bf16 %v1021_v12, %v1013_v14  ;;  %v3405_v13 = vld [vmem:[#allocation3 + $0x1c0] sm:$0xff]   ;;  %v3406_v14 = vld [vmem:[#allocation3 + $0x1c8] sm:$0xff]  }
 0x69e   :  { %v1030_v17 = vrot.slane %v1025_v15, %v3734_v62  ;;  %v3407_v15 = vld [vmem:[#allocation3 + $0x1d0] sm:$0xff]  }
 0x6a0   :  { %v1031_v18 = vadd.bf16 %v1030_v17, %v1022_v16  ;;  %v3408_v16 = vld [vmem:[#allocation3 + $0x1d8] sm:$0xff]   ;;  %v3409_v17 = vld [vmem:[#allocation3 + $0x1e0] sm:$0xff]  }
 0x6a2   :  { %v1032_v19 = vmul.bf16 1056980736, %v1031_v18  ;;  %v3410_v18 = vld [vmem:[#allocation3 + $0x1e8] sm:$0xff]  }
 0x6a4   :  { %3531 = vtanh.bf16 %v1032_v19  ;;  %v3411_v19 = vld [vmem:[#allocation3 + $0x1f0] sm:$0xff]  }
 0x6af   :  { %v3532_v20 = vpop.eup %3531 }
 0x6b0   :  { %v1034_v21 = vmul.bf16 1056980736, %v3532_v20  ;;  %v3412_v20 = vld [vmem:[#allocation3 + $0x1f8] sm:$0xff]  }
 0x6b2   :  { %v1035_v23 = vadd.bf16 1056980736, %v1034_v21 }
 0x6b4   :  { %3162 = vmatmul.mubr.bf16.vlgmr.msra.gmra.mrb[12].mxu0 %v1035_v23 }
 0x6b5   :  { %3201 = vmatprep.mubr.msk.bf16.mxu0 %vm3606_vm3, %v3605_v22  ;;  %3186 = vmatpush3.bf16.msra.mxu0 %v3405_v13 }
 0x6b6   :  { %3187 = vmatprep.subr.bf16.mxu0 %v3605_v22 }
 0x6b9   :  { %3188 = vmatpush3.bf16.msra.mxu0 %v3406_v14 }
 0x6ba   :  { %3189 = vmatprep.subr.bf16.mxu0 %v3605_v22 }
 0x6bd   :  { %3190 = vmatpush3.bf16.msra.mxu0 %v3407_v15 }
 0x6be   :  { %3191 = vmatprep.subr.bf16.mxu0 %v3605_v22 }
 0x6c1   :  { %3192 = vmatpush3.bf16.msra.mxu0 %v3408_v16 }
 0x6c2   :  { %3193 = vmatprep.subr.bf16.mxu0 %v3605_v22 }
 0x6c5   :  { %3194 = vmatpush3.bf16.msra.mxu0 %v3409_v17 }
 0x6c6   :  { %3195 = vmatprep.subr.bf16.mxu0 %v3605_v22 }
 0x6c9   :  { %3196 = vmatpush3.bf16.msra.mxu0 %v3410_v18 }
 0x6ca   :  { %3197 = vmatprep.subr.bf16.mxu0 %v3605_v22 }
 0x6cd   :  { %3198 = vmatpush3.bf16.msra.mxu0 %v3411_v19 }
 0x6ce   :  { %3199 = vmatprep.subr.bf16.mxu0 %v3605_v22 }
 0x6d1   :  { %3200 = vmatpush3.bf16.msra.mxu0 %v3412_v20 }
 0x6d2   :  { %3225 = vmatprep.subr.bf16.mxu0 %v3605_v22 }
 0x787   :  { %v1135_v32 = vpop.f32.mrb[12].mxu0 }
 0x788   :  { %v1143_v33 = vmul.f32 %v1135_v32, %v1135_v32  ;;  %v1144_v34 = vrot.slane %v1135_v32, 4  ;;  %v3163_v35 = vpop.f32.mrb[13].mxu0  ;;  %v1166_v4 = vpack.c.bf16 %v1135_v32, %v1135_v32 }
 0x789   :  { %v1138_v36 = vpop.f32.mrb[14].mxu0 }
 0x78a   :  { %v1145_v37 = vadd.f32 %v1144_v34, %v1135_v32  ;;  %v1150_v38 = vrot.slane %v1143_v33, 4  ;;  %v3164_v39 = vpop.f32.mrb[15].mxu0 }
 0x78c   :  { %v1146_v40 = vrot.slane %v1145_v37, 2  ;;  %v1151_v41 = vadd.f32 %v1150_v38, %v1143_v33 }
 0x78e   :  { %v1147_v42 = vadd.f32 %v1146_v40, %v1145_v37  ;;  %v1152_v43 = vrot.slane %v1151_v41, 2 }
 0x790   :  { %v1148_v44 = vrot.slane %v1147_v42, 1  ;;  %v1153_v45 = vadd.f32 %v1152_v43, %v1151_v41 }
 0x792   :  { %v1149_v46 = vadd.f32 %v1148_v44, %v1147_v42  ;;  %v1154_v47 = vrot.slane %v1153_v45, 1 }
 0x794   :  { %v1155_v48 = vadd.f32 %v1154_v47, %v1153_v45  ;;  %v1156_v49 = vmul.f32 0.125, %v1149_v46  ;;  %v1294_v45 = vld [vmem:[%s4096_s3 + $0x7] sm:$0x1] }
 0x796   :  { %v1157_v50 = vmul.f32 0.125, %v1155_v48  ;;  %v1158_v51 = vmul.f32 %v1156_v49, %v1156_v49  ;;  %v1295_v48 = vld [vmem:[%s4097_s4 + $0x7] sm:$0x1] }
 0x798   :  { %v1159_v52 = vsub.f32 %v1157_v50, %v1158_v51 }
 0x79a   :  { %v1160_v53 = vmax.f32 %v1159_v52, 0.0 }
 0x79c   :  { %v1161_v54 = vadd.f32 1e-05, %v1160_v53 }
 0x79e   :  { %3533 = vrsqrt.f32 %v1161_v54 }
 0x7a8   :  { %v3534_v57 = vpop.eup %3533 }
 0x7a9   :  { %v1163_v58 = vmul.f32 %v3534_v57, %v1141_v55 }
 0x7ab   :  { %v1164_v60 = vmul.f32 %v1163_v58, %v1156_v49  ;;  %v1167_v61 = vpack.c.bf16 %v1163_v58, %v1163_v58 }
 0x7ad   :  { %v1165_v63 = vsub.f32 %v1142_v59, %v1164_v60  ;;  %v1169_v1 = vpack.i.b16 %v1167_v61, %v1167_v61 }
 0x7af   :  { %v1174_v2 = vrot.slane %v1169_v1, %v3734_v62  ;;  %v1176_v3 = vpack.c.bf16 %v1165_v63, %v1165_v63 }
 0x7b1   :  { %v1178_v5 = vpack.i.b16 %v1176_v3, %v1176_v3  ;;  %v1175_v6 = vmul.bf16 %v1174_v2, %v1166_v4  ;;  %v3413_v3 = vld [vmem:[#allocation3 + $0x200] sm:$0xff]   ;;  %v3414_v4 = vld [vmem:[#allocation3 + $0x208] sm:$0xff]  }
 0x7b3   :  { %v1183_v7 = vrot.slane %v1178_v5, %v3734_v62  ;;  %v3415_v5 = vld [vmem:[#allocation3 + $0x210] sm:$0xff]  }
 0x7b5   :  { %v1184_v8 = vadd.bf16 %v1183_v7, %v1175_v6  ;;  %v3416_v6 = vld [vmem:[#allocation3 + $0x218] sm:$0xff]   ;;  %v3417_v7 = vld [vmem:[#allocation3 + $0x220] sm:$0xff]  }
 0x7b7   :  { %v1185_v9 = vmul.bf16 1056980736, %v1184_v8  ;;  %v3418_v8 = vld [vmem:[#allocation3 + $0x228] sm:$0xff]  }
 0x7b9   :  { %3535 = vtanh.bf16 %v1185_v9  ;;  %v3419_v9 = vld [vmem:[#allocation3 + $0x230] sm:$0xff]  }
 0x7c4   :  { %v3536_v10 = vpop.eup %3535 }
 0x7c5   :  { %v1187_v11 = vmul.bf16 1056980736, %v3536_v10  ;;  %v3420_v10 = vld [vmem:[#allocation3 + $0x238] sm:$0xff]  }
 0x7c7   :  { %v1188_v12 = vadd.bf16 1056980736, %v1187_v11 }
 0x7c9   :  { %3182 = vmatmul.mubr.bf16.vlgmr.msra.gmra.mrb[12].mxu1 %v1188_v12 }
 0x7ca   :  { %3221 = vmatprep.mubr.msk.bf16.mxu1 %vm3606_vm3, %v3605_v22  ;;  %3206 = vmatpush3.bf16.msra.mxu1 %v3413_v3 }
 0x7cb   :  { %3207 = vmatprep.subr.bf16.mxu1 %v3605_v22 }
 0x7ce   :  { %3208 = vmatpush3.bf16.msra.mxu1 %v3414_v4 }
 0x7cf   :  { %3209 = vmatprep.subr.bf16.mxu1 %v3605_v22 }
 0x7d2   :  { %3210 = vmatpush3.bf16.msra.mxu1 %v3415_v5 }
 0x7d3   :  { %3211 = vmatprep.subr.bf16.mxu1 %v3605_v22 }
 0x7d6   :  { %3212 = vmatpush3.bf16.msra.mxu1 %v3416_v6 }
 0x7d7   :  { %3213 = vmatprep.subr.bf16.mxu1 %v3605_v22 }
 0x7da   :  { %3214 = vmatpush3.bf16.msra.mxu1 %v3417_v7 }
 0x7db   :  { %3215 = vmatprep.subr.bf16.mxu1 %v3605_v22 }
 0x7de   :  { %3216 = vmatpush3.bf16.msra.mxu1 %v3418_v8 }
 0x7df   :  { %3217 = vmatprep.subr.bf16.mxu1 %v3605_v22 }
 0x7e2   :  { %3218 = vmatpush3.bf16.msra.mxu1 %v3419_v9 }
 0x7e3   :  { %3219 = vmatprep.subr.bf16.mxu1 %v3605_v22 }
 0x7e6   :  { %3220 = vmatpush3.bf16.msra.mxu1 %v3420_v10 }
 0x7e7   :  { %3245 = vmatprep.subr.bf16.mxu1 %v3605_v22 }
 0x89c   :  { %v1288_v21 = vpop.f32.mrb[12].mxu1 }
 0x89d   :  { %v1296_v23 = vmul.f32 %v1288_v21, %v1288_v21  ;;  %v1297_v24 = vrot.slane %v1288_v21, 4  ;;  %v3183_v25 = vpop.f32.mrb[13].mxu1  ;;  %v1319_v55 = vpack.c.bf16 %v1288_v21, %v1288_v21 }
 0x89e   :  { %v1291_v26 = vpop.f32.mrb[14].mxu1 }
 0x89f   :  { %v1298_v27 = vadd.f32 %v1297_v24, %v1288_v21  ;;  %v1303_v28 = vrot.slane %v1296_v23, 4  ;;  %v3184_v29 = vpop.f32.mrb[15].mxu1 }
 0x8a1   :  { %v1299_v30 = vrot.slane %v1298_v27, 2  ;;  %v1304_v31 = vadd.f32 %v1303_v28, %v1296_v23 }
 0x8a3   :  { %v1300_v32 = vadd.f32 %v1299_v30, %v1298_v27  ;;  %v1305_v33 = vrot.slane %v1304_v31, 2 }
 0x8a5   :  { %v1301_v34 = vrot.slane %v1300_v32, 1  ;;  %v1306_v35 = vadd.f32 %v1305_v33, %v1304_v31 }
 0x8a7   :  { %v1302_v36 = vadd.f32 %v1301_v34, %v1300_v32  ;;  %v1307_v37 = vrot.slane %v1306_v35, 1 }
 0x8a9   :  { %v1308_v38 = vadd.f32 %v1307_v37, %v1306_v35  ;;  %v1309_v39 = vmul.f32 0.125, %v1302_v36  ;;  %v1447_v35 = vld [vmem:[%s4096_s3 + $0x8] sm:$0x1] }
 0x8ab   :  { %v1310_v40 = vmul.f32 0.125, %v1308_v38  ;;  %v1311_v41 = vmul.f32 %v1309_v39, %v1309_v39  ;;  %v1448_v38 = vld [vmem:[%s4097_s4 + $0x8] sm:$0x1] }
 0x8ad   :  { %v1312_v42 = vsub.f32 %v1310_v40, %v1311_v41 }
 0x8af   :  { %v1313_v43 = vmax.f32 %v1312_v42, 0.0 }
 0x8b1   :  { %v1314_v44 = vadd.f32 1e-05, %v1313_v43 }
 0x8b3   :  { %3537 = vrsqrt.f32 %v1314_v44 }
 0x8bd   :  { %v3538_v46 = vpop.eup %3537 }
 0x8be   :  { %v1316_v47 = vmul.f32 %v3538_v46, %v1294_v45 }
 0x8c0   :  { %v1317_v49 = vmul.f32 %v1316_v47, %v1309_v39  ;;  %v1320_v50 = vpack.c.bf16 %v1316_v47, %v1316_v47 }
 0x8c2   :  { %v1318_v51 = vsub.f32 %v1295_v48, %v1317_v49  ;;  %v1322_v52 = vpack.i.b16 %v1320_v50, %v1320_v50 }
 0x8c4   :  { %v1327_v53 = vrot.slane %v1322_v52, %v3734_v62  ;;  %v1329_v54 = vpack.c.bf16 %v1318_v51, %v1318_v51 }
 0x8c6   :  { %v1331_v57 = vpack.i.b16 %v1329_v54, %v1329_v54  ;;  %v1328_v58 = vmul.bf16 %v1327_v53, %v1319_v55  ;;  %v3421_v54 = vld [vmem:[#allocation3 + $0x240] sm:$0xff]   ;;  %v3422_v55 = vld [vmem:[#allocation3 + $0x248] sm:$0xff]  }
 0x8c8   :  { %v1336_v59 = vrot.slane %v1331_v57, %v3734_v62  ;;  %v3423_v57 = vld [vmem:[#allocation3 + $0x250] sm:$0xff]  }
 0x8ca   :  { %v1337_v60 = vadd.bf16 %v1336_v59, %v1328_v58  ;;  %v3424_v58 = vld [vmem:[#allocation3 + $0x258] sm:$0xff]   ;;  %v3425_v59 = vld [vmem:[#allocation3 + $0x260] sm:$0xff]  }
 0x8cc   :  { %v1338_v61 = vmul.bf16 1056980736, %v1337_v60  ;;  %v3426_v60 = vld [vmem:[#allocation3 + $0x268] sm:$0xff]  }
 0x8ce   :  { %3539 = vtanh.bf16 %v1338_v61  ;;  %v3427_v61 = vld [vmem:[#allocation3 + $0x270] sm:$0xff]  }
 0x8d9   :  { %v3540_v63 = vpop.eup %3539 }
 0x8da   :  { %v1340_v1 = vmul.bf16 1056980736, %v3540_v63  ;;  %v3428_v63 = vld [vmem:[#allocation3 + $0x278] sm:$0xff]  }
 0x8dc   :  { %v1341_v2 = vadd.bf16 1056980736, %v1340_v1 }
 0x8de   :  { %3202 = vmatmul.mubr.bf16.vlgmr.msra.gmra.mrb[16].mxu0 %v1341_v2 }
 0x8df   :  { %3241 = vmatprep.mubr.msk.bf16.mxu0 %vm3606_vm3, %v3605_v22  ;;  %3226 = vmatpush3.bf16.msra.mxu0 %v3421_v54 }
 0x8e0   :  { %3227 = vmatprep.subr.bf16.mxu0 %v3605_v22 }
 0x8e3   :  { %3228 = vmatpush3.bf16.msra.mxu0 %v3422_v55 }
 0x8e4   :  { %3229 = vmatprep.subr.bf16.mxu0 %v3605_v22 }
 0x8e7   :  { %3230 = vmatpush3.bf16.msra.mxu0 %v3423_v57 }
 0x8e8   :  { %3231 = vmatprep.subr.bf16.mxu0 %v3605_v22 }
 0x8eb   :  { %3232 = vmatpush3.bf16.msra.mxu0 %v3424_v58 }
 0x8ec   :  { %3233 = vmatprep.subr.bf16.mxu0 %v3605_v22 }
 0x8ef   :  { %3234 = vmatpush3.bf16.msra.mxu0 %v3425_v59 }
 0x8f0   :  { %3235 = vmatprep.subr.bf16.mxu0 %v3605_v22 }
 0x8f3   :  { %3236 = vmatpush3.bf16.msra.mxu0 %v3426_v60 }
 0x8f4   :  { %3237 = vmatprep.subr.bf16.mxu0 %v3605_v22 }
 0x8f7   :  { %3238 = vmatpush3.bf16.msra.mxu0 %v3427_v61 }
 0x8f8   :  { %3239 = vmatprep.subr.bf16.mxu0 %v3605_v22 }
 0x8fb   :  { %3240 = vmatpush3.bf16.msra.mxu0 %v3428_v63 }
 0x8fc   :  { %3265 = vmatprep.subr.bf16.mxu0 %v3605_v22 }
 0x9b1   :  { %v1441_v11 = vpop.f32.mrb[16].mxu0 }
 0x9b2   :  { %v1449_v12 = vmul.f32 %v1441_v11, %v1441_v11  ;;  %v1450_v13 = vrot.slane %v1441_v11, 4  ;;  %v3203_v14 = vpop.f32.mrb[17].mxu0  ;;  %v1472_v45 = vpack.c.bf16 %v1441_v11, %v1441_v11 }
 0x9b3   :  { %v1444_v15 = vpop.f32.mrb[18].mxu0 }
 0x9b4   :  { %v1451_v16 = vadd.f32 %v1450_v13, %v1441_v11  ;;  %v1456_v17 = vrot.slane %v1449_v12, 4  ;;  %v3204_v18 = vpop.f32.mrb[19].mxu0 }
 0x9b6   :  { %v1452_v19 = vrot.slane %v1451_v16, 2  ;;  %v1457_v20 = vadd.f32 %v1456_v17, %v1449_v12 }
 0x9b8   :  { %v1453_v21 = vadd.f32 %v1452_v19, %v1451_v16  ;;  %v1458_v23 = vrot.slane %v1457_v20, 2 }
 0x9ba   :  { %v1454_v24 = vrot.slane %v1453_v21, 1  ;;  %v1459_v25 = vadd.f32 %v1458_v23, %v1457_v20 }
 0x9bc   :  { %v1455_v26 = vadd.f32 %v1454_v24, %v1453_v21  ;;  %v1460_v27 = vrot.slane %v1459_v25, 1 }
 0x9be   :  { %v1461_v28 = vadd.f32 %v1460_v27, %v1459_v25  ;;  %v1462_v29 = vmul.f32 0.125, %v1455_v26  ;;  %v1600_v25 = vld [vmem:[%s4096_s3 + $0x9] sm:$0x1] }
 0x9c0   :  { %v1463_v30 = vmul.f32 0.125, %v1461_v28  ;;  %v1464_v31 = vmul.f32 %v1462_v29, %v1462_v29  ;;  %v1601_v28 = vld [vmem:[%s4097_s4 + $0x9] sm:$0x1] }
 0x9c2   :  { %v1465_v32 = vsub.f32 %v1463_v30, %v1464_v31 }
 0x9c4   :  { %v1466_v33 = vmax.f32 %v1465_v32, 0.0 }
 0x9c6   :  { %v1467_v34 = vadd.f32 1e-05, %v1466_v33 }
 0x9c8   :  { %3541 = vrsqrt.f32 %v1467_v34 }
 0x9d2   :  { %v3542_v36 = vpop.eup %3541 }
 0x9d3   :  { %v1469_v37 = vmul.f32 %v3542_v36, %v1447_v35 }
 0x9d5   :  { %v1470_v39 = vmul.f32 %v1469_v37, %v1462_v29  ;;  %v1473_v40 = vpack.c.bf16 %v1469_v37, %v1469_v37 }
 0x9d7   :  { %v1471_v41 = vsub.f32 %v1448_v38, %v1470_v39  ;;  %v1475_v42 = vpack.i.b16 %v1473_v40, %v1473_v40 }
 0x9d9   :  { %v1480_v43 = vrot.slane %v1475_v42, %v3734_v62  ;;  %v1482_v44 = vpack.c.bf16 %v1471_v41, %v1471_v41 }
 0x9db   :  { %v1484_v46 = vpack.i.b16 %v1482_v44, %v1482_v44  ;;  %v1481_v47 = vmul.bf16 %v1480_v43, %v1472_v45  ;;  %v3429_v44 = vld [vmem:[#allocation3 + $0x280] sm:$0xff]   ;;  %v3430_v45 = vld [vmem:[#allocation3 + $0x288] sm:$0xff]  }
 0x9dd   :  { %v1489_v48 = vrot.slane %v1484_v46, %v3734_v62  ;;  %v3431_v46 = vld [vmem:[#allocation3 + $0x290] sm:$0xff]  }
 0x9df   :  { %v1490_v49 = vadd.bf16 %v1489_v48, %v1481_v47  ;;  %v3432_v47 = vld [vmem:[#allocation3 + $0x298] sm:$0xff]   ;;  %v3433_v48 = vld [vmem:[#allocation3 + $0x2a0] sm:$0xff]  }
 0x9e1   :  { %v1491_v50 = vmul.bf16 1056980736, %v1490_v49  ;;  %v3434_v49 = vld [vmem:[#allocation3 + $0x2a8] sm:$0xff]  }
 0x9e3   :  { %3543 = vtanh.bf16 %v1491_v50  ;;  %v3435_v50 = vld [vmem:[#allocation3 + $0x2b0] sm:$0xff]  }
 0x9ee   :  { %v3544_v51 = vpop.eup %3543 }
 0x9ef   :  { %v1493_v52 = vmul.bf16 1056980736, %v3544_v51  ;;  %v3436_v51 = vld [vmem:[#allocation3 + $0x2b8] sm:$0xff]  }
 0x9f1   :  { %v1494_v53 = vadd.bf16 1056980736, %v1493_v52 }
 0x9f3   :  { %3222 = vmatmul.mubr.bf16.vlgmr.msra.gmra.mrb[16].mxu1 %v1494_v53 }
 0x9f4   :  { %3261 = vmatprep.mubr.msk.bf16.mxu1 %vm3606_vm3, %v3605_v22  ;;  %3246 = vmatpush3.bf16.msra.mxu1 %v3429_v44 }
 0x9f5   :  { %3247 = vmatprep.subr.bf16.mxu1 %v3605_v22 }
 0x9f8   :  { %3248 = vmatpush3.bf16.msra.mxu1 %v3430_v45 }
 0x9f9   :  { %3249 = vmatprep.subr.bf16.mxu1 %v3605_v22 }
 0x9fc   :  { %3250 = vmatpush3.bf16.msra.mxu1 %v3431_v46 }
 0x9fd   :  { %3251 = vmatprep.subr.bf16.mxu1 %v3605_v22 }
 0xa00   :  { %3252 = vmatpush3.bf16.msra.mxu1 %v3432_v47 }
 0xa01   :  { %3253 = vmatprep.subr.bf16.mxu1 %v3605_v22 }
 0xa04   :  { %3254 = vmatpush3.bf16.msra.mxu1 %v3433_v48 }
 0xa05   :  { %3255 = vmatprep.subr.bf16.mxu1 %v3605_v22 }
 0xa08   :  { %3256 = vmatpush3.bf16.msra.mxu1 %v3434_v49 }
 0xa09   :  { %3257 = vmatprep.subr.bf16.mxu1 %v3605_v22 }
 0xa0c   :  { %3258 = vmatpush3.bf16.msra.mxu1 %v3435_v50 }
 0xa0d   :  { %3259 = vmatprep.subr.bf16.mxu1 %v3605_v22 }
 0xa10   :  { %3260 = vmatpush3.bf16.msra.mxu1 %v3436_v51 }
 0xa11   :  { %3285 = vmatprep.subr.bf16.mxu1 %v3605_v22 }
 0xac6   :  { %v1594_v1 = vpop.f32.mrb[16].mxu1 }
 0xac7   :  { %v1602_v2 = vmul.f32 %v1594_v1, %v1594_v1  ;;  %v1603_v3 = vrot.slane %v1594_v1, 4  ;;  %v3223_v4 = vpop.f32.mrb[17].mxu1  ;;  %v1625_v35 = vpack.c.bf16 %v1594_v1, %v1594_v1 }
 0xac8   :  { %v1597_v5 = vpop.f32.mrb[18].mxu1 }
 0xac9   :  { %v1604_v6 = vadd.f32 %v1603_v3, %v1594_v1  ;;  %v1609_v7 = vrot.slane %v1602_v2, 4  ;;  %v3224_v8 = vpop.f32.mrb[19].mxu1 }
 0xacb   :  { %v1605_v9 = vrot.slane %v1604_v6, 2  ;;  %v1610_v10 = vadd.f32 %v1609_v7, %v1602_v2 }
 0xacd   :  { %v1606_v11 = vadd.f32 %v1605_v9, %v1604_v6  ;;  %v1611_v12 = vrot.slane %v1610_v10, 2 }
 0xacf   :  { %v1607_v13 = vrot.slane %v1606_v11, 1  ;;  %v1612_v14 = vadd.f32 %v1611_v12, %v1610_v10 }
 0xad1   :  { %v1608_v15 = vadd.f32 %v1607_v13, %v1606_v11  ;;  %v1613_v16 = vrot.slane %v1612_v14, 1 }
 0xad3   :  { %v1614_v17 = vadd.f32 %v1613_v16, %v1612_v14  ;;  %v1615_v18 = vmul.f32 0.125, %v1608_v15  ;;  %v1753_v14 = vld [vmem:[%s4096_s3 + $0xa] sm:$0x1] }
 0xad5   :  { %v1616_v19 = vmul.f32 0.125, %v1614_v17  ;;  %v1617_v20 = vmul.f32 %v1615_v18, %v1615_v18  ;;  %v1754_v17 = vld [vmem:[%s4097_s4 + $0xa] sm:$0x1] }
 0xad7   :  { %v1618_v21 = vsub.f32 %v1616_v19, %v1617_v20 }
 0xad9   :  { %v1619_v23 = vmax.f32 %v1618_v21, 0.0 }
 0xadb   :  { %v1620_v24 = vadd.f32 1e-05, %v1619_v23 }
 0xadd   :  { %3545 = vrsqrt.f32 %v1620_v24 }
 0xae7   :  { %v3546_v26 = vpop.eup %3545 }
 0xae8   :  { %v1622_v27 = vmul.f32 %v3546_v26, %v1600_v25 }
 0xaea   :  { %v1623_v29 = vmul.f32 %v1622_v27, %v1615_v18  ;;  %v1626_v30 = vpack.c.bf16 %v1622_v27, %v1622_v27 }
 0xaec   :  { %v1624_v31 = vsub.f32 %v1601_v28, %v1623_v29  ;;  %v1628_v32 = vpack.i.b16 %v1626_v30, %v1626_v30 }
 0xaee   :  { %v1633_v33 = vrot.slane %v1628_v32, %v3734_v62  ;;  %v1635_v34 = vpack.c.bf16 %v1624_v31, %v1624_v31 }
 0xaf0   :  { %v1637_v36 = vpack.i.b16 %v1635_v34, %v1635_v34  ;;  %v1634_v37 = vmul.bf16 %v1633_v33, %v1625_v35  ;;  %v3437_v34 = vld [vmem:[#allocation3 + $0x2c0] sm:$0xff]   ;;  %v3438_v35 = vld [vmem:[#allocation3 + $0x2c8] sm:$0xff]  }
 0xaf2   :  { %v1642_v38 = vrot.slane %v1637_v36, %v3734_v62  ;;  %v3439_v36 = vld [vmem:[#allocation3 + $0x2d0] sm:$0xff]  }
 0xaf4   :  { %v1643_v39 = vadd.bf16 %v1642_v38, %v1634_v37  ;;  %v3440_v37 = vld [vmem:[#allocation3 + $0x2d8] sm:$0xff]   ;;  %v3441_v38 = vld [vmem:[#allocation3 + $0x2e0] sm:$0xff]  }
 0xaf6   :  { %v1644_v40 = vmul.bf16 1056980736, %v1643_v39  ;;  %v3442_v39 = vld [vmem:[#allocation3 + $0x2e8] sm:$0xff]  }
 0xaf8   :  { %3547 = vtanh.bf16 %v1644_v40  ;;  %v3443_v40 = vld [vmem:[#allocation3 + $0x2f0] sm:$0xff]  }
 0xb03   :  { %v3548_v41 = vpop.eup %3547 }
 0xb04   :  { %v1646_v42 = vmul.bf16 1056980736, %v3548_v41  ;;  %v3444_v41 = vld [vmem:[#allocation3 + $0x2f8] sm:$0xff]  }
 0xb06   :  { %v1647_v43 = vadd.bf16 1056980736, %v1646_v42 }
 0xb08   :  { %3242 = vmatmul.mubr.bf16.vlgmr.msra.gmra.mrb[20].mxu0 %v1647_v43 }
 0xb09   :  { %3281 = vmatprep.mubr.msk.bf16.mxu0 %vm3606_vm3, %v3605_v22  ;;  %3266 = vmatpush3.bf16.msra.mxu0 %v3437_v34 }
 0xb0a   :  { %3267 = vmatprep.subr.bf16.mxu0 %v3605_v22 }
 0xb0d   :  { %3268 = vmatpush3.bf16.msra.mxu0 %v3438_v35 }
 0xb0e   :  { %3269 = vmatprep.subr.bf16.mxu0 %v3605_v22 }
 0xb11   :  { %3270 = vmatpush3.bf16.msra.mxu0 %v3439_v36 }
 0xb12   :  { %3271 = vmatprep.subr.bf16.mxu0 %v3605_v22 }
 0xb15   :  { %3272 = vmatpush3.bf16.msra.mxu0 %v3440_v37 }
 0xb16   :  { %3273 = vmatprep.subr.bf16.mxu0 %v3605_v22 }
 0xb19   :  { %3274 = vmatpush3.bf16.msra.mxu0 %v3441_v38 }
 0xb1a   :  { %3275 = vmatprep.subr.bf16.mxu0 %v3605_v22 }
 0xb1d   :  { %3276 = vmatpush3.bf16.msra.mxu0 %v3442_v39 }
 0xb1e   :  { %3277 = vmatprep.subr.bf16.mxu0 %v3605_v22 }
 0xb21   :  { %3278 = vmatpush3.bf16.msra.mxu0 %v3443_v40 }
 0xb22   :  { %3279 = vmatprep.subr.bf16.mxu0 %v3605_v22 }
 0xb25   :  { %3280 = vmatpush3.bf16.msra.mxu0 %v3444_v41 }
 0xb26   :  { %3305 = vmatprep.subr.bf16.mxu0 %v3605_v22 }
 0xbdb   :  { %v1747_v52 = vpop.f32.mrb[20].mxu0 }
 0xbdc   :  { %v1755_v53 = vmul.f32 %v1747_v52, %v1747_v52  ;;  %v1756_v54 = vrot.slane %v1747_v52, 4  ;;  %v3243_v55 = vpop.f32.mrb[21].mxu0  ;;  %v1778_v25 = vpack.c.bf16 %v1747_v52, %v1747_v52 }
 0xbdd   :  { %v1750_v57 = vpop.f32.mrb[22].mxu0 }
 0xbde   :  { %v1757_v58 = vadd.f32 %v1756_v54, %v1747_v52  ;;  %v1762_v59 = vrot.slane %v1755_v53, 4  ;;  %v3244_v60 = vpop.f32.mrb[23].mxu0 }
 0xbe0   :  { %v1758_v61 = vrot.slane %v1757_v58, 2  ;;  %v1763_v63 = vadd.f32 %v1762_v59, %v1755_v53 }
 0xbe2   :  { %v1759_v1 = vadd.f32 %v1758_v61, %v1757_v58  ;;  %v1764_v2 = vrot.slane %v1763_v63, 2 }
 0xbe4   :  { %v1760_v3 = vrot.slane %v1759_v1, 1  ;;  %v1765_v4 = vadd.f32 %v1764_v2, %v1763_v63 }
 0xbe6   :  { %v1761_v5 = vadd.f32 %v1760_v3, %v1759_v1  ;;  %v1766_v6 = vrot.slane %v1765_v4, 1 }
 0xbe8   :  { %v1767_v7 = vadd.f32 %v1766_v6, %v1765_v4  ;;  %v1768_v8 = vmul.f32 0.125, %v1761_v5  ;;  %v1906_v4 = vld [vmem:[%s4096_s3 + $0xb] sm:$0x1] }
 0xbea   :  { %v1769_v9 = vmul.f32 0.125, %v1767_v7  ;;  %v1770_v10 = vmul.f32 %v1768_v8, %v1768_v8  ;;  %v1907_v7 = vld [vmem:[%s4097_s4 + $0xb] sm:$0x1] }
 0xbec   :  { %v1771_v11 = vsub.f32 %v1769_v9, %v1770_v10 }
 0xbee   :  { %v1772_v12 = vmax.f32 %v1771_v11, 0.0 }
 0xbf0   :  { %v1773_v13 = vadd.f32 1e-05, %v1772_v12 }
 0xbf2   :  { %3549 = vrsqrt.f32 %v1773_v13 }
 0xbfc   :  { %v3550_v15 = vpop.eup %3549 }
 0xbfd   :  { %v1775_v16 = vmul.f32 %v3550_v15, %v1753_v14 }
 0xbff   :  { %v1776_v18 = vmul.f32 %v1775_v16, %v1768_v8  ;;  %v1779_v19 = vpack.c.bf16 %v1775_v16, %v1775_v16 }
 0xc01   :  { %v1777_v20 = vsub.f32 %v1754_v17, %v1776_v18  ;;  %v1781_v21 = vpack.i.b16 %v1779_v19, %v1779_v19 }
 0xc03   :  { %v1786_v23 = vrot.slane %v1781_v21, %v3734_v62  ;;  %v1788_v24 = vpack.c.bf16 %v1777_v20, %v1777_v20 }
 0xc05   :  { %v1790_v26 = vpack.i.b16 %v1788_v24, %v1788_v24  ;;  %v1787_v27 = vmul.bf16 %v1786_v23, %v1778_v25  ;;  %v3445_v24 = vld [vmem:[#allocation3 + $0x300] sm:$0xff]   ;;  %v3446_v25 = vld [vmem:[#allocation3 + $0x308] sm:$0xff]  }
 0xc07   :  { %v1795_v28 = vrot.slane %v1790_v26, %v3734_v62  ;;  %v3447_v26 = vld [vmem:[#allocation3 + $0x310] sm:$0xff]  }
 0xc09   :  { %v1796_v29 = vadd.bf16 %v1795_v28, %v1787_v27  ;;  %v3448_v27 = vld [vmem:[#allocation3 + $0x318] sm:$0xff]   ;;  %v3449_v28 = vld [vmem:[#allocation3 + $0x320] sm:$0xff]  }
 0xc0b   :  { %v1797_v30 = vmul.bf16 1056980736, %v1796_v29  ;;  %v3450_v29 = vld [vmem:[#allocation3 + $0x328] sm:$0xff]  }
 0xc0d   :  { %3551 = vtanh.bf16 %v1797_v30  ;;  %v3451_v30 = vld [vmem:[#allocation3 + $0x330] sm:$0xff]  }
 0xc18   :  { %v3552_v31 = vpop.eup %3551 }
 0xc19   :  { %v1799_v32 = vmul.bf16 1056980736, %v3552_v31  ;;  %v3452_v31 = vld [vmem:[#allocation3 + $0x338] sm:$0xff]  }
 0xc1b   :  { %v1800_v33 = vadd.bf16 1056980736, %v1799_v32 }
 0xc1d   :  { %3262 = vmatmul.mubr.bf16.vlgmr.msra.gmra.mrb[20].mxu1 %v1800_v33 }
 0xc1e   :  { %3301 = vmatprep.mubr.msk.bf16.mxu1 %vm3606_vm3, %v3605_v22  ;;  %3286 = vmatpush3.bf16.msra.mxu1 %v3445_v24 }
 0xc1f   :  { %3287 = vmatprep.subr.bf16.mxu1 %v3605_v22 }
 0xc22   :  { %3288 = vmatpush3.bf16.msra.mxu1 %v3446_v25 }
 0xc23   :  { %3289 = vmatprep.subr.bf16.mxu1 %v3605_v22 }
 0xc26   :  { %3290 = vmatpush3.bf16.msra.mxu1 %v3447_v26 }
 0xc27   :  { %3291 = vmatprep.subr.bf16.mxu1 %v3605_v22 }
 0xc2a   :  { %3292 = vmatpush3.bf16.msra.mxu1 %v3448_v27 }
 0xc2b   :  { %3293 = vmatprep.subr.bf16.mxu1 %v3605_v22 }
 0xc2e   :  { %3294 = vmatpush3.bf16.msra.mxu1 %v3449_v28 }
 0xc2f   :  { %3295 = vmatprep.subr.bf16.mxu1 %v3605_v22 }
 0xc32   :  { %3296 = vmatpush3.bf16.msra.mxu1 %v3450_v29 }
 0xc33   :  { %3297 = vmatprep.subr.bf16.mxu1 %v3605_v22 }
 0xc36   :  { %3298 = vmatpush3.bf16.msra.mxu1 %v3451_v30 }
 0xc37   :  { %3299 = vmatprep.subr.bf16.mxu1 %v3605_v22 }
 0xc3a   :  { %3300 = vmatpush3.bf16.msra.mxu1 %v3452_v31 }
 0xcf0   :  { %v1900_v42 = vpop.f32.mrb[20].mxu1 }
 0xcf1   :  { %v1908_v43 = vmul.f32 %v1900_v42, %v1900_v42  ;;  %v1909_v44 = vrot.slane %v1900_v42, 4  ;;  %v3263_v45 = vpop.f32.mrb[21].mxu1  ;;  %v1931_v14 = vpack.c.bf16 %v1900_v42, %v1900_v42 }
 0xcf2   :  { %v1903_v46 = vpop.f32.mrb[22].mxu1 }
 0xcf3   :  { %v1910_v47 = vadd.f32 %v1909_v44, %v1900_v42  ;;  %v1915_v48 = vrot.slane %v1908_v43, 4  ;;  %v3264_v49 = vpop.f32.mrb[23].mxu1 }
 0xcf5   :  { %v1911_v50 = vrot.slane %v1910_v47, 2  ;;  %v1916_v51 = vadd.f32 %v1915_v48, %v1908_v43 }
 0xcf7   :  { %v1912_v52 = vadd.f32 %v1911_v50, %v1910_v47  ;;  %v1917_v53 = vrot.slane %v1916_v51, 2 }
 0xcf9   :  { %v1913_v54 = vrot.slane %v1912_v52, 1  ;;  %v1918_v55 = vadd.f32 %v1917_v53, %v1916_v51 }
 0xcfb   :  { %v1914_v57 = vadd.f32 %v1913_v54, %v1912_v52  ;;  %v1919_v58 = vrot.slane %v1918_v55, 1 }
 0xcfd   :  { %v1920_v59 = vadd.f32 %v1919_v58, %v1918_v55  ;;  %v1921_v60 = vmul.f32 0.125, %v1914_v57  ;;  %v2059_v55 = vld [vmem:[%s4096_s3 + $0xc] sm:$0x1] }
 0xcff   :  { %v1922_v61 = vmul.f32 0.125, %v1920_v59  ;;  %v1923_v63 = vmul.f32 %v1921_v60, %v1921_v60  ;;  %v2060_v59 = vld [vmem:[%s4097_s4 + $0xc] sm:$0x1] }
 0xd01   :  { %v1924_v1 = vsub.f32 %v1922_v61, %v1923_v63 }
 0xd03   :  { %v1925_v2 = vmax.f32 %v1924_v1, 0.0 }
 0xd05   :  { %v1926_v3 = vadd.f32 1e-05, %v1925_v2 }
 0xd07   :  { %3553 = vrsqrt.f32 %v1926_v3 }
 0xd11   :  { %v3554_v5 = vpop.eup %3553 }
 0xd12   :  { %v1928_v6 = vmul.f32 %v3554_v5, %v1906_v4 }
 0xd14   :  { %v1929_v8 = vmul.f32 %v1928_v6, %v1921_v60  ;;  %v1932_v9 = vpack.c.bf16 %v1928_v6, %v1928_v6 }
 0xd16   :  { %v1930_v10 = vsub.f32 %v1907_v7, %v1929_v8  ;;  %v1934_v11 = vpack.i.b16 %v1932_v9, %v1932_v9 }
 0xd18   :  { %v1939_v12 = vrot.slane %v1934_v11, %v3734_v62  ;;  %v1941_v13 = vpack.c.bf16 %v1930_v10, %v1930_v10 }
 0xd1a   :  { %v1943_v15 = vpack.i.b16 %v1941_v13, %v1941_v13  ;;  %v1940_v16 = vmul.bf16 %v1939_v12, %v1931_v14  ;;  %v3453_v13 = vld [vmem:[#allocation3 + $0x340] sm:$0xff]   ;;  %v3454_v14 = vld [vmem:[#allocation3 + $0x348] sm:$0xff]  }
 0xd1c   :  { %v1948_v17 = vrot.slane %v1943_v15, %v3734_v62  ;;  %v3455_v15 = vld [vmem:[#allocation3 + $0x350] sm:$0xff]  }
 0xd1e   :  { %v1949_v18 = vadd.bf16 %v1948_v17, %v1940_v16  ;;  %v3456_v16 = vld [vmem:[#allocation3 + $0x358] sm:$0xff]   ;;  %v3457_v17 = vld [vmem:[#allocation3 + $0x360] sm:$0xff]  }
 0xd20   :  { %v1950_v19 = vmul.bf16 1056980736, %v1949_v18  ;;  %v3458_v18 = vld [vmem:[#allocation3 + $0x368] sm:$0xff]  }
 0xd22   :  { %3555 = vtanh.bf16 %v1950_v19  ;;  %v3459_v19 = vld [vmem:[#allocation3 + $0x370] sm:$0xff]  }
 0xd2d   :  { %v3556_v20 = vpop.eup %3555 }
 0xd2e   :  { %v1952_v21 = vmul.bf16 1056980736, %v3556_v20  ;;  %v3460_v20 = vld [vmem:[#allocation3 + $0x378] sm:$0xff]  }
 0xd30   :  { %v1953_v23 = vadd.bf16 1056980736, %v1952_v21 }
 0xd32   :  { %3282 = vmatmul.mubr.bf16.vlgmr.msra.gmra.mrb[24].mxu0 %v1953_v23 }
 0xd33   :  { %3321 = vmatprep.mubr.msk.bf16.mxu0 %vm3606_vm3, %v3605_v22  ;;  %3306 = vmatpush3.bf16.msra.mxu0 %v3453_v13  ;;  %v3481_v13 = vld [vmem:[%s4098_s5 + $0x64] ss:$16 sps:$4 sm:$0xff]  }
 0xd34   :  { %3307 = vmatprep.subr.bf16.mxu0 %v3605_v22 }
 0xd37   :  { %3308 = vmatpush3.bf16.msra.mxu0 %v3454_v14  ;;  %v3484_v14 = vld [vmem:[%s4098_s5 + $0x6c] ss:$16 sps:$4 sm:$0xff]  }
 0xd38   :  { %3309 = vmatprep.subr.bf16.mxu0 %v3605_v22 }
 0xd3b   :  { %3310 = vmatpush3.bf16.msra.mxu0 %v3455_v15  ;;  %v3479_v15 = vld [vmem:[%s4098_s5 + $0x60] ss:$16 sps:$4 sm:$0xff]  }
 0xd3c   :  { %3311 = vmatprep.subr.bf16.mxu0 %v3605_v22 }
 0xd3f   :  { %3312 = vmatpush3.bf16.msra.mxu0 %v3456_v16  ;;  %v3482_v16 = vld [vmem:[%s4098_s5 + $0x68] ss:$16 sps:$4 sm:$0xff]  }
 0xd40   :  { %3313 = vmatprep.subr.bf16.mxu0 %v3605_v22 }
 0xd43   :  { %3314 = vmatpush3.bf16.msra.mxu0 %v3457_v17  ;;  %v3487_v17 = vld [vmem:[%s4098_s5 + $0x84] ss:$16 sps:$4 sm:$0xff]  }
 0xd44   :  { %3315 = vmatprep.subr.bf16.mxu0 %v3605_v22 }
 0xd47   :  { %3316 = vmatpush3.bf16.msra.mxu0 %v3458_v18  ;;  %v3490_v18 = vld [vmem:[%s4098_s5 + $0x8c] ss:$16 sps:$4 sm:$0xff]  }
 0xd48   :  { %3317 = vmatprep.subr.bf16.mxu0 %v3605_v22 }
 0xd4b   :  { %3318 = vmatpush3.bf16.msra.mxu0 %v3459_v19  ;;  %v3485_v19 = vld [vmem:[%s4098_s5 + $0x80] ss:$16 sps:$4 sm:$0xff]  }
 0xd4c   :  { %3319 = vmatprep.subr.bf16.mxu0 %v3605_v22 }
 0xd4f   :  { %3320 = vmatpush3.bf16.msra.mxu0 %v3460_v20  ;;  %v3488_v20 = vld [vmem:[%s4098_s5 + $0x88] ss:$16 sps:$4 sm:$0xff]  }
 0xe05   :  { %v2053_v32 = vpop.f32.mrb[24].mxu0 }
 0xe06   :  { %v2061_v33 = vmul.f32 %v2053_v32, %v2053_v32  ;;  %v2062_v34 = vrot.slane %v2053_v32, 4  ;;  %v3283_v35 = vpop.f32.mrb[25].mxu0  ;;  %v2084_v4 = vpack.c.bf16 %v2053_v32, %v2053_v32 }
 0xe07   :  { %v2056_v36 = vpop.f32.mrb[26].mxu0 }
 0xe08   :  { %v2063_v37 = vadd.f32 %v2062_v34, %v2053_v32  ;;  %v2068_v38 = vrot.slane %v2061_v33, 4  ;;  %v3284_v39 = vpop.f32.mrb[27].mxu0 }
 0xe0a   :  { %v2064_v40 = vrot.slane %v2063_v37, 2  ;;  %v2069_v41 = vadd.f32 %v2068_v38, %v2061_v33 }
 0xe0c   :  { %v2065_v42 = vadd.f32 %v2064_v40, %v2063_v37  ;;  %v2070_v43 = vrot.slane %v2069_v41, 2 }
 0xe0e   :  { %v2066_v44 = vrot.slane %v2065_v42, 1  ;;  %v2071_v45 = vadd.f32 %v2070_v43, %v2069_v41 }
 0xe10   :  { %v2067_v46 = vadd.f32 %v2066_v44, %v2065_v42  ;;  %v2072_v47 = vrot.slane %v2071_v45, 1  ;;  %v2212_v44 = vld [vmem:[%s4096_s3 + $0xd] sm:$0x1] }
 0xe12   :  { %v2073_v48 = vadd.f32 %v2072_v47, %v2071_v45  ;;  %v2074_v49 = vmul.f32 0.125, %v2067_v46  ;;  %v2213_v47 = vld [vmem:[%s4097_s4 + $0xd] sm:$0x1] }
 0xe14   :  { %v2075_v50 = vmul.f32 0.125, %v2073_v48  ;;  %v2076_v51 = vmul.f32 %v2074_v49, %v2074_v49 }
 0xe16   :  { %v2077_v52 = vsub.f32 %v2075_v50, %v2076_v51 }
 0xe18   :  { %v2078_v53 = vmax.f32 %v2077_v52, 0.0 }
 0xe1a   :  { %v2079_v54 = vadd.f32 1e-05, %v2078_v53 }
 0xe1c   :  { %3557 = vrsqrt.f32 %v2079_v54 }
 0xe26   :  { %v3558_v57 = vpop.eup %3557 }
 0xe27   :  { %v2081_v58 = vmul.f32 %v3558_v57, %v2059_v55 }
 0xe29   :  { %v2082_v60 = vmul.f32 %v2081_v58, %v2074_v49  ;;  %v2085_v61 = vpack.c.bf16 %v2081_v58, %v2081_v58 }
 0xe2b   :  { %v2083_v63 = vsub.f32 %v2060_v59, %v2082_v60  ;;  %v2087_v1 = vpack.i.b16 %v2085_v61, %v2085_v61 }
 0xe2d   :  { %v2092_v2 = vrot.slane %v2087_v1, %v3734_v62  ;;  %v2094_v3 = vpack.c.bf16 %v2083_v63, %v2083_v63 }
 0xe2f   :  { %v2096_v5 = vpack.i.b16 %v2094_v3, %v2094_v3  ;;  %v2093_v6 = vmul.bf16 %v2092_v2, %v2084_v4  ;;  %v3463_v2 = vld [vmem:[%s4098_s5 + $0x4] ss:$16 sps:$4 sm:$0xff]   ;;  %v3466_v3 = vld [vmem:[%s4098_s5 + $0xc] ss:$16 sps:$4 sm:$0xff]   ;;  %v3461_v4 = vld [vmem:[%s4098_s5] ss:$16 sps:$4 sm:$0xff]  }
 0xe30   :  { %2627 = vmatprep.subr.bf16.mxu1 %v3463_v2  ;;  %2668 = vmatprep.subr.bf16.mxu0 %v3466_v3 }
 0xe31   :  { %v2101_v7 = vrot.slane %v2096_v5, %v3734_v62  ;;  %v3464_v5 = vld [vmem:[%s4098_s5 + $0x8] ss:$16 sps:$4 sm:$0xff]  }
 0xe33   :  { %v2102_v8 = vadd.bf16 %v2101_v7, %v2093_v6  ;;  %v3472_v6 = vld [vmem:[%s4098_s5 + $0x2c] ss:$16 sps:$4 sm:$0xff]   ;;  %v3467_v7 = vld [vmem:[%s4098_s5 + $0x20] ss:$16 sps:$4 sm:$0xff]  }
 0xe35   :  { %v2103_v9 = vmul.bf16 1056980736, %v2102_v8  ;;  %v3470_v8 = vld [vmem:[%s4098_s5 + $0x28] ss:$16 sps:$4 sm:$0xff]  }
 0xe37   :  { %3559 = vtanh.bf16 %v2103_v9  ;;  %v3475_v9 = vld [vmem:[%s4098_s5 + $0x44] ss:$16 sps:$4 sm:$0xff]  }
 0xe42   :  { %v3560_v10 = vpop.eup %3559 }
 0xe43   :  { %v2105_v11 = vmul.bf16 1056980736, %v3560_v10  ;;  %v3478_v10 = vld [vmem:[%s4098_s5 + $0x4c] ss:$16 sps:$4 sm:$0xff]  }
 0xe45   :  { %v2106_v12 = vadd.bf16 1056980736, %v2105_v11  ;;  %v3473_v11 = vld [vmem:[%s4098_s5 + $0x40] ss:$16 sps:$4 sm:$0xff]  }
 0xe47   :  { %3302 = vmatmul.mubr.bf16.vlgmr.msra.gmra.mrb[24].mxu1 %v2106_v12  ;;  %v3476_v12 = vld [vmem:[%s4098_s5 + $0x48] ss:$16 sps:$4 sm:$0xff]  }
 0xe48   :  { %2659 = vmatprep.mubr.bf16.mxu1 %v3604_v0  ;;  %2628 = vmatpush1.bf16.msra.mxu1 %v3461_v4 }
 0xf1a   :  { %v2206_v21 = vpop.f32.mrb[24].mxu1 }
 0xf1b   :  { %v2214_v23 = vmul.f32 %v2206_v21, %v2206_v21  ;;  %v2215_v24 = vrot.slane %v2206_v21, 4  ;;  %v3303_v25 = vpop.f32.mrb[25].mxu1  ;;  %v2237_v54 = vpack.c.bf16 %v2206_v21, %v2206_v21 }
 0xf1c   :  { %v2209_v26 = vpop.f32.mrb[26].mxu1  ;;  %v3496_v25 = vld [vmem:[%s4098_s5 + $0xac] ss:$16 sps:$4 sm:$0xff]  }
 0xf1d   :  { %v2216_v27 = vadd.f32 %v2215_v24, %v2206_v21  ;;  %v2221_v28 = vrot.slane %v2214_v23, 4  ;;  %v3304_v29 = vpop.f32.mrb[27].mxu1  ;;  %v3493_v21 = vld [vmem:[%s4098_s5 + $0xa4] ss:$16 sps:$4 sm:$0xff]   ;;  %v3494_v24 = vld [vmem:[%s4098_s5 + $0xa8] ss:$16 sps:$4 sm:$0xff]  }
 0xf1e   :  { %v3499_v26 = vld [vmem:[%s4098_s5 + $0xc4] ss:$16 sps:$4 sm:$0xff]   ;;  %v3500_v29 = vld [vmem:[%s4098_s5 + $0xc8] ss:$16 sps:$4 sm:$0xff]  }
 0xf1f   :  { %v2217_v30 = vrot.slane %v2216_v27, 2  ;;  %v2222_v31 = vadd.f32 %v2221_v28, %v2214_v23  ;;  %v3491_v23 = vld [vmem:[%s4098_s5 + $0xa0] ss:$16 sps:$4 sm:$0xff]  }
 0xf20   :  { %v3497_v28 = vld [vmem:[%s4098_s5 + $0xc0] ss:$16 sps:$4 sm:$0xff]  }
 0xf21   :  { %v2218_v32 = vadd.f32 %v2217_v30, %v2216_v27  ;;  %v2223_v33 = vrot.slane %v2222_v31, 2  ;;  %v3502_v27 = vld [vmem:[%s4098_s5 + $0xcc] ss:$16 sps:$4 sm:$0xff]   ;;  %v3505_v30 = vld [vmem:[%s4098_s5 + $0xe4] ss:$16 sps:$4 sm:$0xff]  }
 0xf23   :  { %v2219_v34 = vrot.slane %v2218_v32, 1  ;;  %v2224_v35 = vadd.f32 %v2223_v33, %v2222_v31  ;;  %v3508_v31 = vld [vmem:[%s4098_s5 + $0xec] ss:$16 sps:$4 sm:$0xff]   ;;  %v3506_v33 = vld [vmem:[%s4098_s5 + $0xe8] ss:$16 sps:$4 sm:$0xff]  }
 0xf25   :  { %v2220_v36 = vadd.f32 %v2219_v34, %v2218_v32  ;;  %v2225_v37 = vrot.slane %v2224_v35, 1  ;;  %v3503_v32 = vld [vmem:[%s4098_s5 + $0xe0] ss:$16 sps:$4 sm:$0xff]  }
 0xf27   :  { %v2226_v38 = vadd.f32 %v2225_v37, %v2224_v35  ;;  %v2227_v39 = vmul.f32 0.125, %v2220_v36 }
 0xf29   :  { %v2228_v22 = vmul.f32 0.125, %v2226_v38  ;;  %v2229_v40 = vmul.f32 %v2227_v39, %v2227_v39 }
 0xf2b   :  { %v2230_v41 = vsub.f32 %v2228_v22, %v2229_v40 }
 0xf2d   :  { %v2231_v42 = vmax.f32 %v2230_v41, 0.0 }
 0xf2f   :  { %v2232_v43 = vadd.f32 1e-05, %v2231_v42 }
 0xf31   :  { %3561 = vrsqrt.f32 %v2232_v43 }
 0xf3b   :  { %v3562_v45 = vpop.eup %3561 }
 0xf3c   :  { %v2234_v46 = vmul.f32 %v3562_v45, %v2212_v44 }
 0xf3e   :  { %v2235_v48 = vmul.f32 %v2234_v46, %v2227_v39  ;;  %v2238_v49 = vpack.c.bf16 %v2234_v46, %v2234_v46 }
 0xf40   :  { %v2236_v50 = vsub.f32 %v2213_v47, %v2235_v48  ;;  %v2240_v51 = vpack.i.b16 %v2238_v49, %v2238_v49 }
 0xf42   :  { %v2245_v52 = vrot.slane %v2240_v51, %v3734_v62  ;;  %v2247_v53 = vpack.c.bf16 %v2236_v50, %v2236_v50 }
 0xf44   :  { %v2249_v55 = vpack.i.b16 %v2247_v53, %v2247_v53  ;;  %v2246_v57 = vmul.bf16 %v2245_v52, %v2237_v54 }
 0xf46   :  { %v2254_v58 = vrot.slane %v2249_v55, %v3734_v62 }
 0xf48   :  { %v2255_v59 = vadd.bf16 %v2254_v58, %v2246_v57  ;;  %v2365_v57 = vld [vmem:[%s4096_s3 + $0xe] sm:$0x1] }
 0xf4a   :  { %v2256_v60 = vmul.bf16 1056980736, %v2255_v59 }
 0xf4c   :  { %3563 = vtanh.bf16 %v2256_v60  ;;  %v2366_v60 = vld [vmem:[%s4097_s4 + $0xe] sm:$0x1] }
 0xf57   :  { %v3564_v61 = vpop.eup %3563 }
 0xf58   :  { %v2258_v63 = vmul.bf16 1056980736, %v3564_v61 }
 0xf5a   :  { %v2259_v1 = vadd.bf16 1056980736, %v2258_v63 }
 0xf5c   :  { %3322 = vmatmul.mubr.bf16.vlgmr.msra.gmra.mrb[28].mxu0 %v2259_v1 }
 0xf5d   :  { %2700 = vmatprep.mubr.bf16.mxu0 %v3604_v0  ;;  %2669 = vmatpush1.bf16.msra.mxu0 %v3464_v5  ;;  %v3469_v0 = vld [vmem:[%s4098_s5 + $0x24] ss:$16 sps:$4 sm:$0xff]  }
 0xf5e   :  { %2629 = vmatprep.subr.bf16.mxu1 %v3469_v0  ;;  %2670 = vmatprep.subr.bf16.mxu0 %v3472_v6 }
 0xf5f   :  { %2630 = vmatpush1.bf16.msra.mxu1 %v3467_v7 }
 0xf60   :  { %2631 = vmatprep.subr.bf16.mxu1 %v3475_v9 }
 0xf61   :  { %2671 = vmatpush1.bf16.msra.mxu0 %v3470_v8 }
 0xf62   :  { %2672 = vmatprep.subr.bf16.mxu0 %v3478_v10 }
 0xf63   :  { %2632 = vmatpush1.bf16.msra.mxu1 %v3473_v11 }
 0xf64   :  { %2633 = vmatprep.subr.bf16.mxu1 %v3481_v13  ;;  %v2457_v13 = vsub.s32 2, %v3728_v56 }
 0xf65   :  { %2673 = vmatpush1.bf16.msra.mxu0 %v3476_v12 }
 0xf66   :  { %2674 = vmatprep.subr.bf16.mxu0 %v3484_v14  ;;  %v2445_v14 = vld [vmem:[%s4099_s6] sm:$0xf] }
 0xf67   :  { %2634 = vmatpush1.bf16.msra.mxu1 %v3479_v15  ;;  %v2453_v15 = vsub.s32 1, %v3728_v56 }
 0xf68   :  { %2635 = vmatprep.subr.bf16.mxu1 %v3487_v17  ;;  %v2450_v17 = vrot.slane %v2445_v14, %v3734_v62 }
 0xf69   :  { %2675 = vmatpush1.bf16.msra.mxu0 %v3482_v16  ;;  %v2461_v16 = vsub.s32 3, %v3728_v56 }
 0xf6a   :  { %2676 = vmatprep.subr.bf16.mxu0 %v3490_v18  ;;  %v2458_v18 = vrot.slane %v2445_v14, %v2457_v13 }
 0xf6b   :  { %2636 = vmatpush1.bf16.msra.mxu1 %v3485_v19  ;;  %v2454_v19 = vrot.slane %v2445_v14, %v2453_v15 }
 0xf6c   :  { %2637 = vmatprep.subr.bf16.mxu1 %v3493_v21 }
 0xf6d   :  { %2677 = vmatpush1.bf16.msra.mxu0 %v3488_v20  ;;  %v2462_v20 = vrot.slane %v2445_v14, %v2461_v16 }
 0xf6e   :  { %2678 = vmatprep.subr.bf16.mxu0 %v3496_v25 }
 0xf6f   :  { %2638 = vmatpush1.bf16.msra.mxu1 %v3491_v23 }
 0xf70   :  { %2639 = vmatprep.subr.bf16.mxu1 %v3499_v26 }
 0xf71   :  { %2679 = vmatpush1.bf16.msra.mxu0 %v3494_v24 }
 0xf72   :  { %2680 = vmatprep.subr.bf16.mxu0 %v3502_v27 }
 0xf73   :  { %2640 = vmatpush1.bf16.msra.mxu1 %v3497_v28 }
 0xf74   :  { %2641 = vmatprep.subr.bf16.mxu1 %v3505_v30 }
 0xf75   :  { %2681 = vmatpush1.bf16.msra.mxu0 %v3500_v29 }
 0xf76   :  { %2682 = vmatprep.subr.bf16.mxu0 %v3508_v31 }
 0xf77   :  { %2642 = vmatpush1.bf16.msra.mxu1 %v3503_v32 }
 0xf79   :  { %2683 = vmatpush1.bf16.msra.mxu0 %v3506_v33 }
0x102f   :  { %v2359_v34 = vpop.f32.mrb[28].mxu0 }
0x1030   :  { %v2367_v35 = vmul.f32 %v2359_v34, %v2359_v34  ;;  %v2368_v36 = vrot.slane %v2359_v34, 4  ;;  %v3323_v37 = vpop.f32.mrb[29].mxu0  ;;  %v2390_v5 = vpack.c.bf16 %v2359_v34, %v2359_v34 }
0x1031   :  { %v2362_v38 = vpop.f32.mrb[30].mxu0 }
0x1032   :  { %v2369_v39 = vadd.f32 %v2368_v36, %v2359_v34  ;;  %v2374_v22 = vrot.slane %v2367_v35, 4  ;;  %v3324_v40 = vpop.f32.mrb[31].mxu0 }
0x1034   :  { %v2370_v41 = vrot.slane %v2369_v39, 2  ;;  %v2375_v42 = vadd.f32 %v2374_v22, %v2367_v35 }
0x1036   :  { %v2371_v43 = vadd.f32 %v2370_v41, %v2369_v39  ;;  %v2376_v44 = vrot.slane %v2375_v42, 2 }
0x1038   :  { %v2372_v45 = vrot.slane %v2371_v43, 1  ;;  %v2377_v46 = vadd.f32 %v2376_v44, %v2375_v42 }
0x103a   :  { %v2373_v47 = vadd.f32 %v2372_v45, %v2371_v43  ;;  %v2378_v48 = vrot.slane %v2377_v46, 1 }
0x103c   :  { %v2379_v49 = vadd.f32 %v2378_v48, %v2377_v46  ;;  %v2380_v50 = vmul.f32 0.125, %v2373_v47 }
0x103e   :  { %v2381_v51 = vmul.f32 0.125, %v2379_v49  ;;  %v2382_v52 = vmul.f32 %v2380_v50, %v2380_v50 }
0x1040   :  { %v2383_v53 = vsub.f32 %v2381_v51, %v2382_v52 }
0x1042   :  { %v2384_v54 = vmax.f32 %v2383_v53, 0.0 }
0x1044   :  { %v2385_v55 = vadd.f32 1e-05, %v2384_v54 }
0x1046   :  { %3565 = vrsqrt.f32 %v2385_v55 }
0x1050   :  { %v3566_v58 = vpop.eup %3565 }
0x1051   :  { %v2387_v59 = vmul.f32 %v3566_v58, %v2365_v57 }
0x1053   :  { %v2388_v61 = vmul.f32 %v2387_v59, %v2380_v50  ;;  %v2391_v63 = vpack.c.bf16 %v2387_v59, %v2387_v59 }
0x1055   :  { %v2389_v1 = vsub.f32 %v2366_v60, %v2388_v61  ;;  %v2393_v2 = vpack.i.b16 %v2391_v63, %v2391_v63 }
0x1057   :  { %v2398_v3 = vrot.slane %v2393_v2, %v3734_v62  ;;  %v2400_v4 = vpack.c.bf16 %v2389_v1, %v2389_v1 }
0x1059   :  { %v2402_v0 = vpack.i.b16 %v2400_v4, %v2400_v4  ;;  %v2399_v6 = vmul.bf16 %v2398_v3, %v2390_v5 }
0x105b   :  { %v2407_v7 = vrot.slane %v2402_v0, %v3734_v62 }
0x105d   :  { %v2408_v8 = vadd.bf16 %v2407_v7, %v2399_v6 }
0x105f   :  { %v2409_v9 = vmul.bf16 1056980736, %v2408_v8 }
0x1061   :  { %3567 = vtanh.bf16 %v2409_v9 }
0x106c   :  { %v3568_v10 = vpop.eup %3567 }
0x106d   :  { %v2411_v11 = vmul.bf16 1056980736, %v3568_v10 }
0x106f   :  { %v2412_v12 = vadd.bf16 1056980736, %v2411_v11 }
0x1071   :  { %2660 = vmatmul.mubr.bf16.vlgmr.msra.gmra.mrb[28].mxu1 %v2412_v12  ;;  %2701 = vmatmul.mubr.bf16.vlgmr.msra.gmra.mrb[32].mxu0 %v2412_v12 }
0x1144   :  { %v2661_v21 = vpop.f32.mrb[28].mxu1  ;;  %v2702_v23 = vpop.f32.mrb[32].mxu0 }
0x1145   :  { %v2662_v24 = vadd.f32 %v2661_v21, %v2450_v17  ;;  %v2703_v25 = vadd.f32 %v2702_v23, %v2458_v18  ;;  %v2663_v26 = vpop.f32.mrb[29].mxu1  ;;  %v2704_v27 = vpop.f32.mrb[33].mxu0 }
0x1146   :  { %v2664_v28 = vadd.f32 %v2663_v26, %v2454_v19  ;;  %v2705_v29 = vadd.f32 %v2704_v27, %v2462_v20  ;;  %v2665_v30 = vpop.f32.mrb[30].mxu1  ;;  %v2706_v31 = vpop.f32.mrb[34].mxu0 }
0x1147   :  { %v2709_v32 = vmul.f32 0.5, %v2662_v24  ;;  %v2711_v33 = vmul.f32 0.5, %v2703_v25  ;;  %v2666_v34 = vpop.f32.mrb[31].mxu1  ;;  %v2707_v35 = vpop.f32.mrb[35].mxu0 }
0x1148   :  { %v2710_v56 = vmul.f32 0.5, %v2664_v28  ;;  %v2712_v36 = vmul.f32 0.5, %v2705_v29 }
0x1149   :  { %3569 = vtanh.f32 %v2709_v32 }
0x114a   :  { %3571 = vtanh.f32 %v2711_v33 }
0x114b   :  { %3573 = vtanh.f32 %v2710_v56 }
0x114c   :  { %3575 = vtanh.f32 %v2712_v36 }
0x1153   :  { %v3570_v62 = vpop.eup %3569 }
0x1154   :  { %v3572_v37 = vpop.eup %3571  ;;  %v2717_v38 = vmul.f32 0.5, %v3570_v62 }
0x1155   :  { %v3574_v39 = vpop.eup %3573  ;;  %v2719_v22 = vmul.f32 0.5, %v3572_v37 }
0x1156   :  { %v3576_v40 = vpop.eup %3575  ;;  %v2721_v41 = vadd.f32 0.5, %v2717_v38  ;;  %v2718_v42 = vmul.f32 0.5, %v3574_v39 }
0x1157   :  { %v2723_v43 = vadd.f32 0.5, %v2719_v22  ;;  %v2720_v44 = vmul.f32 0.5, %v3576_v40 }
0x1158   :  { %2725 = vst [vmem:[%s4100_s7] sm:$0xff] %v2721_v41  ;;  %v2722_v45 = vadd.f32 0.5, %v2718_v42 }
0x1159   :  { %2727 = vst [vmem:[%s4100_s7 + $0x10] sm:$0xff] %v2723_v43  ;;  %v2724_v46 = vadd.f32 0.5, %v2720_v44 }
0x115a   :  { %2726 = vst [vmem:[%s4100_s7 + $0x8] sm:$0xff] %v2722_v45 }
0x115b   :  { %2729 = vst.msk [vmem:[%s4100_s7 + $0x18] sm:$0xff] %vm2728_vm4, %v2724_v46 }
0x115c   :  { %2734 = vsyncpa [#allocation4], 1 }

</bundles_post_ra>
